<compile_context>
chip_gen: v7x
topology: tpu7x:2x2x1
jax: 0.10.0
libtpu: 0.0.40
codegen_flags: <defaults>
</compile_context>

<pallas_src>
import functools

import jax
import jax.numpy as jnp
from jax import lax
from jax.experimental import pallas as pl
from jax.experimental.pallas import tpu as pltpu

EPS = 1e-5


# ---------------------------------------------------------------------------
# Kernel 1: per-channel batch statistics (sum, sum of squares), tiled reduction
# ---------------------------------------------------------------------------

def _bn_sums_kernel(x_ref, sum_ref, sq_ref):
    # x_ref: (1, C, hw_tile) block.  The (C, 1) outputs stay resident in VMEM across the
    # whole grid (same output block every step) -> accumulator pattern with pl.when init.
    @pl.when((pl.program_id(0) == 0) & (pl.program_id(1) == 0))
    def _():
        sum_ref[...] = jnp.zeros_like(sum_ref)
        sq_ref[...] = jnp.zeros_like(sq_ref)

    x = x_ref[0].astype(jnp.float32)                      # (C, hw_tile)
    sum_ref[...] += jnp.sum(x, axis=1, keepdims=True)     # (C, 1)
    sq_ref[...] += jnp.sum(x * x, axis=1, keepdims=True)


def _pick_hw_tile(hw):
    # Largest lane-tile (multiple of 128) that divides HW; keeps VMEM bounded and the
    # DMA pipeline double-buffered for realistic spatial sizes.
    for t in (2048, 1024, 512, 256, 128):
        if hw % t == 0:
            return t
    return hw


def bn_sums(x, cin):
    """Per-channel sum / sum-of-squares over (N, HW) for the first `cin` channels.

    x: (N, C, HW) float32 with C >= cin.  `cin` must either equal C (fallback path) or be a
    multiple of 8 (aligned path) so the channel-prefix block satisfies the (8,128) rule.
    """
    n, c, hw = x.shape
    assert cin == c or cin % 8 == 0
    hw_tile = _pick_hw_tile(hw)
    return pl.pallas_call(
        _bn_sums_kernel,
        out_shape=(jax.ShapeDtypeStruct((cin, 1), jnp.float32),
                   jax.ShapeDtypeStruct((cin, 1), jnp.float32)),
        grid=(n, hw // hw_tile),
        in_specs=[pl.BlockSpec((1, cin, hw_tile), lambda i, j: (i, 0, j))],
        out_specs=(pl.BlockSpec((cin, 1), lambda i, j: (0, 0)),
                   pl.BlockSpec((cin, 1), lambda i, j: (0, 0))),
        compiler_params=pltpu.CompilerParams(
            dimension_semantics=("arbitrary", "arbitrary")),
    )(x)


# ---------------------------------------------------------------------------
# Kernel 2: fused BN-apply + ReLU + implicit zero pad + im2col + 3x3 conv matmul
# ---------------------------------------------------------------------------

def _fused_bn_relu_conv3x3_kernel(x_ref, scale_ref, shift_ref, w_ref, b_ref, col_ref,
                                  o_ref, patches_ref, *, H, W):
    # x_ref:       (1, Cin, H*W)  activation block (channel prefix of the dense buffer)
    # scale_ref:   (Cin, 1)       folded BN scale  (gamma / sqrt(var + eps))
    # shift_ref:   (Cin, 1)       folded BN shift  (beta - mean * scale)
    # w_ref:       (Cout, 9*Cin)  bf16, row (kh*3+kw)*Cin + ci  ==  w_hwio[kh, kw, ci, :]
    # b_ref:       (Cout, 1)
    # col_ref:     (1, H*W) int32 column index (p % W) of every flattened pixel
    # o_ref:       (1, Cout, H*W) lane-dense output block
    # patches_ref: (9*Cin, H*W)   f32 VMEM scratch -- the im2col matrix
    hw = H * W
    cin = x_ref.shape[1]

    x = x_ref[0].astype(jnp.float32)                                   # (Cin, HW)
    y = jnp.maximum(x * scale_ref[...] + shift_ref[...], 0.0)          # BN + ReLU

    # Build the im2col matrix in VMEM.  The 1-pixel zero halo is synthesized here (never
    # written to HBM): each tap is a lane-shifted copy of y; out-of-image columns are
    # masked to zero and out-of-image rows fall outside the written lane range (zero fill).
    patches_ref[...] = jnp.zeros_like(patches_ref)
    col = col_ref[...]                                                 # (1, HW) int32
    for kh in range(3):
        for kw in range(3):
            t = kh * 3 + kw
            dh, dw = kh - 1, kw - 1
            off = dh * W + dw                   # flat source offset of this tap
            a = max(0, -off)                    # first written destination lane
            L = hw - abs(off)                   # number of written lanes
            src = y[:, a + off: a + off + L]    # (Cin, L)
            if dw != 0:
                cw = col[:, a: a + L]
                keep = (cw + dw >= 0) & (cw + dw < W)
                src = jnp.where(keep, src, 0.0)
            patches_ref[t * cin:(t + 1) * cin, a: a + L] = src

    # One lane-dense MXU matmul: (Cout, 9*Cin) @ (9*Cin, HW) -> (Cout, HW), f32 accumulate.
    patches = patches_ref[...].astype(jnp.bfloat16)
    acc = jnp.dot(w_ref[...], patches, preferred_element_type=jnp.float32)
    o_ref[0] = (acc + b_ref[...]).astype(o_ref.dtype)


def fused_bn_relu_conv3x3(x_buf, scale, shift, w2_bf16, bias, col, *, H, W, cin, cout,
                          out_channel_offset=None):
    """BN-apply + ReLU + 3x3 SAME conv on the first `cin` channels of x_buf (N, C, H*W).

    out_channel_offset=None  -> returns a fresh (N, Cout, H*W) array.
    out_channel_offset=k     -> x_buf is the preallocated dense buffer; the result is
                                written in place into channels [k, k+Cout) via
                                input_output_aliases and the updated buffer is returned.
    """
    n, c_total, hw = x_buf.shape
    assert hw == H * W
    kernel = functools.partial(_fused_bn_relu_conv3x3_kernel, H=H, W=W)
    in_specs = [
        pl.BlockSpec((1, cin, hw), lambda i: (i, 0, 0)),
        pl.BlockSpec((cin, 1), lambda i: (0, 0)),
        pl.BlockSpec((cin, 1), lambda i: (0, 0)),
        pl.BlockSpec((cout, 9 * cin), lambda i: (0, 0)),
        pl.BlockSpec((cout, 1), lambda i: (0, 0)),
        pl.BlockSpec((1, hw), lambda i: (0, 0)),
    ]
    scratch = [pltpu.VMEM((9 * cin, hw), jnp.float32)]
    # NOTE: for realistic DenseNet sizes (H=W=56, Cin up to ~512) add an H-slab grid axis
    # (with a 1-row halo) and set vmem_limit_bytes so blocks fit v7x's 64 MiB VMEM and both
    # TensorCores get parallel work; at these toy sizes one image per step is the larger,
    # overhead-amortizing block choice.
    compiler_params = pltpu.CompilerParams(dimension_semantics=("parallel",))
    args = (x_buf, scale, shift, w2_bf16, bias, col)

    if out_channel_offset is None:
        return pl.pallas_call(
            kernel,
            out_shape=jax.ShapeDtypeStruct((n, cout, hw), jnp.float32),
            grid=(n,),
            in_specs=in_specs,
            out_specs=pl.BlockSpec((1, cout, hw), lambda i: (i, 0, 0)),
            scratch_shapes=scratch,
            compiler_params=compiler_params,
        )(*args)

    assert out_channel_offset % cout == 0 and cout % 8 == 0 and cin % 8 == 0
    cb = out_channel_offset // cout
    return pl.pallas_call(
        kernel,
        out_shape=jax.ShapeDtypeStruct((n, c_total, hw), jnp.float32),
        grid=(n,),
        in_specs=in_specs,
        out_specs=pl.BlockSpec((1, cout, hw), lambda i: (i, cb, 0)),
        scratch_shapes=scratch,
        input_output_aliases={0: 0},        # write the channel slab in place
        compiler_params=compiler_params,
    )(*args)


# ---------------------------------------------------------------------------
# DenseNet forward
# ---------------------------------------------------------------------------

def densenet_forward(x_nchw, params):
    """x = concat([x, Conv3x3(ReLU(BN(x)))], channel axis) for every block.

    x_nchw: (N, C0, H, W) float32 (PyTorch NCHW).  params: list of (gamma, beta, w_hwio, b).
    """
    n, c0, H, W = x_nchw.shape
    hw = H * W
    num_layers = len(params)
    cout = params[0][2].shape[-1]
    for (_, _, w, _) in params:
        assert w.shape[-1] == cout

    x_flat = x_nchw.reshape(n, c0, hw).astype(jnp.float32)
    col = (jnp.arange(hw, dtype=jnp.int32) % W).reshape(1, hw)
    count = jnp.float32(n * hw)

    def fold_bn(gamma, beta, s, sq, cin):
        mean = s / count                                    # (cin, 1)
        var = jnp.maximum(sq / count - mean * mean, 0.0)    # biased var (training BN)
        scale = gamma.reshape(cin, 1) * lax.rsqrt(var + EPS)
        shift = beta.reshape(cin, 1) - mean * scale
        return scale, shift

    def pack_weight(w_hwio, cin):
        # (3, 3, Cin, Cout) -> (Cout, 9*Cin) bf16, tap-major / input-channel-minor rows.
        return w_hwio.reshape(9 * cin, cout).T.astype(jnp.bfloat16)

    aligned = (cout % 8 == 0) and (c0 % cout == 0)
    if aligned:
        # Preallocated channel-slab buffer; each layer writes its slab in place
        # (input_output_aliases) -> no per-layer concatenation copies.
        c_total = c0 + num_layers * cout
        buf = jnp.zeros((n, c_total, hw), jnp.float32)
        buf = lax.dynamic_update_slice(buf, x_flat, (0, 0, 0))
        for i, (gamma, beta, w, b) in enumerate(params):
            cin = c0 + i * cout
            assert w.shape == (3, 3, cin, cout)
            s, sq = bn_sums(buf, cin)
            scale, shift = fold_bn(gamma, beta, s, sq, cin)
            buf = fused_bn_relu_conv3x3(
                buf, scale, shift, pack_weight(w, cin), b.reshape(cout, 1), col,
                H=H, W=W, cin=cin, cout=cout, out_channel_offset=cin)
        return buf.reshape(n, c_total, H, W)

    # Fallback (unaligned channel counts): same fused kernel, dense concat done by XLA.
    x = x_flat
    for (gamma, beta, w, b) in params:
        cin = x.shape[1]
        assert w.shape == (3, 3, cin, cout)
        s, sq = bn_sums(x, cin)
        scale, shift = fold_bn(gamma, beta, s, sq, cin)
        out = fused_bn_relu_conv3x3(
            x, scale, shift, pack_weight(w, cin), b.reshape(cout, 1), col,
            H=H, W=W, cin=cin, cout=cout)
        x = jnp.concatenate([x, out], axis=1)
    return x.reshape(n, x.shape[1], H, W)


# ---------------------------------------------------------------------------
# Pure-JAX reference (f32), PyTorch training-mode BN semantics
# ---------------------------------------------------------------------------

def densenet_reference(x_nchw, params):
    x = jnp.transpose(x_nchw, (0, 2, 3, 1)).astype(jnp.float32)   # NCHW -> NHWC
    for gamma, beta, w, b in params:
        mean = jnp.mean(x, axis=(0, 1, 2))
        var = jnp.var(x, axis=(0, 1, 2))
        y = jnp.maximum((x - mean) / jnp.sqrt(var + EPS) * gamma + beta, 0.0)
        out = lax.conv_general_dilated(
            y, w, window_strides=(1, 1), padding="SAME",
            dimension_numbers=("NHWC", "HWIO", "NHWC")) + b
        x = jnp.concatenate([x, out], axis=-1)
    return jnp.transpose(x, (0, 3, 1, 2))                         # NHWC -> NCHW


# ---------------------------------------------------------------------------
# Parameter init
# ---------------------------------------------------------------------------

def init_params(key, num_convs, in_channels, out_channels):
    params = []
    for i in range(num_convs):
        cin = in_channels + i * out_channels
        key, k1, k2, k3, k4 = jax.random.split(key, 5)
        gamma = 1.0 + 0.1 * jax.random.normal(k1, (cin,), jnp.float32)
        beta = 0.1 * jax.random.normal(k2, (cin,), jnp.float32)
        w = 0.1 * jax.random.normal(k3, (3, 3, cin, out_channels), jnp.float32)  # HWIO
        b = 0.1 * jax.random.normal(k4, (out_channels,), jnp.float32)
        params.append((gamma, beta, w, b))
    return params


# ---------------------------------------------------------------------------
# main
# ---------------------------------------------------------------------------

if __name__ == "__main__":
    N, H, W = 2, 16, 16
    num_convs = 2

    key = jax.random.PRNGKey(0)
    fwd = jax.jit(densenet_forward)

    # Config 1 (primary): 8-aligned channels -> in-place channel-slab path.
    in_c, out_c = 8, 8
    key, kx, kp = jax.random.split(key, 3)
    x = jax.random.normal(kx, (N, in_c, H, W), jnp.float32)          # NCHW like PyTorch
    params = init_params(kp, num_convs, in_c, out_c)
    out = jax.block_until_ready(fwd(x, params))
    assert out.shape == (N, in_c + num_convs * out_c, H, W), out.shape
    ref = jax.block_until_ready(densenet_reference(x, params))
    err = float(jnp.max(jnp.abs(out - ref)))
    # Tolerance loosened vs a pure-f32 run because conv operands go through the bf16 MXU path.
    assert jnp.allclose(out, ref, atol=1e-2, rtol=1e-2), err

    # Config 2: unaligned channels (the 4-channel example) -> concat fallback path.
    in_c2, out_c2 = 4, 8
    key, kx2, kp2 = jax.random.split(key, 3)
    x2 = jax.random.normal(kx2, (N, in_c2, H, W), jnp.float32)
    params2 = init_params(kp2, num_convs, in_c2, out_c2)
    out2 = jax.block_until_ready(fwd(x2, params2))
    assert out2.shape == (N, in_c2 + num_convs * out_c2, H, W), out2.shape
    ref2 = jax.block_until_ready(densenet_reference(x2, params2))
    err2 = float(jnp.max(jnp.abs(out2 - ref2)))
    assert jnp.allclose(out2, ref2, atol=1e-2, rtol=1e-2), err2

    print("KERNEL_OK")
</pallas_src>

<mosaic_0001>
module attributes {stable_mosaic.version = 11 : i64} {
  func.func @_bn_sums_kernel(%arg0: i32, %arg1: i32, %arg2: memref<1x8x256xf32, #tpu.memory_space<vmem>>, %arg3: memref<8x1xf32, #tpu.memory_space<vmem>>, %arg4: memref<8x1xf32, #tpu.memory_space<vmem>>) attributes {dimension_semantics = [#tpu.dimension_semantics<arbitrary>, #tpu.dimension_semantics<arbitrary>], iteration_bounds = array<i64: 2, 1>, scalar_prefetch = 0 : i64, scratch_operands = 0 : i64, tpu.core_type = #tpu.core_type<tc>, window_params = [{transform_indices = @transform_0, window_bounds = array<i64: 1, 8, 256>}, {pipeline_mode = #tpu.pipeline_mode<synchronous>, transform_indices = @transform_1, window_bounds = array<i64: 8, 1>}, {pipeline_mode = #tpu.pipeline_mode<synchronous>, transform_indices = @transform_2, window_bounds = array<i64: 8, 1>}]} {
    %c0_i32 = arith.constant 0 : i32
    %0 = arith.cmpi eq, %arg0, %c0_i32 : i32
    %c0_i32_0 = arith.constant 0 : i32
    %1 = arith.cmpi eq, %arg1, %c0_i32_0 : i32
    %2 = arith.andi %0, %1 : i1
    %3 = arith.extui %2 : i1 to i32
    %c0_i32_1 = arith.constant 0 : i32
    %4 = arith.cmpi ne, %3, %c0_i32_1 : i32
    scf.if %4 {
      %cst_13 = arith.constant 0.000000e+00 : f32
      %18 = vector.broadcast %cst_13 : f32 to vector<8x1xf32>
      %c0_14 = arith.constant 0 : index
      %c0_15 = arith.constant 0 : index
      %19 = vector.load %arg3[%c0_14, %c0_15] : memref<8x1xf32, #tpu.memory_space<vmem>>, vector<8x1xf32>
      tpu.vector_store %arg3[%c0_14, %c0_15], %18 {strides = array<i32>} : memref<8x1xf32, #tpu.memory_space<vmem>>, vector<8x1xf32>,
      %cst_16 = arith.constant 0.000000e+00 : f32
      %20 = vector.broadcast %cst_16 : f32 to vector<8x1xf32>
      %c0_17 = arith.constant 0 : index
      %c0_18 = arith.constant 0 : index
      %21 = vector.load %arg4[%c0_17, %c0_18] : memref<8x1xf32, #tpu.memory_space<vmem>>, vector<8x1xf32>
      tpu.vector_store %arg4[%c0_17, %c0_18], %20 {strides = array<i32>} : memref<8x1xf32, #tpu.memory_space<vmem>>, vector<8x1xf32>,
    } else {
    }
    %c0 = arith.constant 0 : index
    %c0_2 = arith.constant 0 : index
    %c0_3 = arith.constant 0 : index
    %5 = vector.load %arg2[%c0, %c0_2, %c0_3] : memref<1x8x256xf32, #tpu.memory_space<vmem>>, vector<1x8x256xf32>
    %6 = vector.shape_cast %5 : vector<1x8x256xf32> to vector<8x256xf32>
    %c0_4 = arith.constant 0 : index
    %c0_5 = arith.constant 0 : index
    %7 = vector.load %arg3[%c0_4, %c0_5] : memref<8x1xf32, #tpu.memory_space<vmem>>, vector<8x1xf32>
    %cst = arith.constant dense<0.000000e+00> : vector<8xf32>
    %8 = vector.multi_reduction <add>, %6, %cst [1] : vector<8x256xf32> to vector<8xf32>
    %9 = vector.shape_cast %8 : vector<8xf32> to vector<8x1xf32>
    %10 = arith.addf %7, %9 : vector<8x1xf32>
    %c0_6 = arith.constant 0 : index
    %c0_7 = arith.constant 0 : index
    %11 = vector.load %arg3[%c0_6, %c0_7] : memref<8x1xf32, #tpu.memory_space<vmem>>, vector<8x1xf32>
    tpu.vector_store %arg3[%c0_6, %c0_7], %10 {strides = array<i32>} : memref<8x1xf32, #tpu.memory_space<vmem>>, vector<8x1xf32>,
    %c0_8 = arith.constant 0 : index
    %c0_9 = arith.constant 0 : index
    %12 = vector.load %arg4[%c0_8, %c0_9] : memref<8x1xf32, #tpu.memory_space<vmem>>, vector<8x1xf32>
    %13 = arith.mulf %6, %6 : vector<8x256xf32>
    %cst_10 = arith.constant dense<0.000000e+00> : vector<8xf32>
    %14 = vector.multi_reduction <add>, %13, %cst_10 [1] : vector<8x256xf32> to vector<8xf32>
    %15 = vector.shape_cast %14 : vector<8xf32> to vector<8x1xf32>
    %16 = arith.addf %12, %15 : vector<8x1xf32>
    %c0_11 = arith.constant 0 : index
    %c0_12 = arith.constant 0 : index
    %17 = vector.load %arg4[%c0_11, %c0_12] : memref<8x1xf32, #tpu.memory_space<vmem>>, vector<8x1xf32>
    tpu.vector_store %arg4[%c0_11, %c0_12], %16 {strides = array<i32>} : memref<8x1xf32, #tpu.memory_space<vmem>>, vector<8x1xf32>,
    return
  }
  func.func @transform_0(%arg0: i32, %arg1: i32) -> (i32, i32, i32) {
    %c0_i32 = arith.constant 0 : i32
    %c0_i32_0 = arith.constant 0 : i32
    return %arg0, %c0_i32, %arg1 : i32, i32, i32
  }
  func.func @transform_1(%arg0: i32, %arg1: i32) -> (i32, i32) {
    %c0_i32 = arith.constant 0 : i32
    %c0_i32_0 = arith.constant 0 : i32
    %c0_i32_1 = arith.constant 0 : i32
    return %c0_i32, %c0_i32_0 : i32, i32
  }
  func.func @transform_2(%arg0: i32, %arg1: i32) -> (i32, i32) {
    %c0_i32 = arith.constant 0 : i32
    %c0_i32_0 = arith.constant 0 : i32
    %c0_i32_1 = arith.constant 0 : i32
    return %c0_i32, %c0_i32_0 : i32, i32
  }
}

module attributes {stable_mosaic.version = 11 : i64} {
  func.func @_fused_bn_relu_conv3x3_kernel(%arg0: i32, %arg1: memref<1x8x256xf32, #tpu.memory_space<vmem>>, %arg2: memref<8x1xf32, #tpu.memory_space<vmem>>, %arg3: memref<8x1xf32, #tpu.memory_space<vmem>>, %arg4: memref<8x72xbf16, #tpu.memory_space<vmem>>, %arg5: memref<8x1xf32, #tpu.memory_space<vmem>>, %arg6: memref<1x256xi32, #tpu.memory_space<vmem>>, %arg7: memref<1x8x256xf32, #tpu.memory_space<vmem>>, %arg8: memref<72x256xf32, #tpu.memory_space<vmem>>) attributes {dimension_semantics = [#tpu.dimension_semantics<parallel>], iteration_bounds = array<i64: 2>, scalar_prefetch = 0 : i64, scratch_operands = 1 : i64, tpu.core_type = #tpu.core_type<tc>, window_params = [{transform_indices = @transform_0, window_bounds = array<i64: 1, 8, 256>}, {pipeline_mode = #tpu.pipeline_mode<synchronous>, transform_indices = @transform_1, window_bounds = array<i64: 8, 1>}, {pipeline_mode = #tpu.pipeline_mode<synchronous>, transform_indices = @transform_2, window_bounds = array<i64: 8, 1>}, {pipeline_mode = #tpu.pipeline_mode<synchronous>, transform_indices = @transform_3, window_bounds = array<i64: 8, 72>}, {pipeline_mode = #tpu.pipeline_mode<synchronous>, transform_indices = @transform_4, window_bounds = array<i64: 8, 1>}, {pipeline_mode = #tpu.pipeline_mode<synchronous>, transform_indices = @transform_5, window_bounds = array<i64: 1, 256>}, {transform_indices = @transform_6, window_bounds = array<i64: 1, 8, 256>}]} {
    %c0 = arith.constant 0 : index
    %c0_0 = arith.constant 0 : index
    %c0_1 = arith.constant 0 : index
    %0 = vector.load %arg1[%c0, %c0_0, %c0_1] : memref<1x8x256xf32, #tpu.memory_space<vmem>>, vector<1x8x256xf32>
    %1 = vector.shape_cast %0 : vector<1x8x256xf32> to vector<8x256xf32>
    %c0_2 = arith.constant 0 : index
    %c0_3 = arith.constant 0 : index
    %2 = vector.load %arg2[%c0_2, %c0_3] : memref<8x1xf32, #tpu.memory_space<vmem>>, vector<8x1xf32>
    %3 = vector.broadcast %2 : vector<8x1xf32> to vector<8x256xf32>
    %4 = arith.mulf %1, %3 : vector<8x256xf32>
    %c0_4 = arith.constant 0 : index
    %c0_5 = arith.constant 0 : index
    %5 = vector.load %arg3[%c0_4, %c0_5] : memref<8x1xf32, #tpu.memory_space<vmem>>, vector<8x1xf32>
    %6 = vector.broadcast %5 : vector<8x1xf32> to vector<8x256xf32>
    %7 = arith.addf %4, %6 : vector<8x256xf32>
    %cst = arith.constant 0.000000e+00 : f32
    %8 = vector.broadcast %cst : f32 to vector<8x256xf32>
    %9 = arith.maximumf %7, %8 : vector<8x256xf32>
    %cst_6 = arith.constant 0.000000e+00 : f32
    %10 = vector.broadcast %cst_6 : f32 to vector<72x256xf32>
    %c0_7 = arith.constant 0 : index
    %c0_8 = arith.constant 0 : index
    %11 = vector.load %arg8[%c0_7, %c0_8] : memref<72x256xf32, #tpu.memory_space<vmem>>, vector<72x256xf32>
    tpu.vector_store %arg8[%c0_7, %c0_8], %10 {strides = array<i32>} : memref<72x256xf32, #tpu.memory_space<vmem>>, vector<72x256xf32>,
    %c0_9 = arith.constant 0 : index
    %c0_10 = arith.constant 0 : index
    %12 = vector.load %arg6[%c0_9, %c0_10] : memref<1x256xi32, #tpu.memory_space<vmem>>, vector<1x256xi32>
    %13 = vector.extract_strided_slice %9 {offsets = [0, 0], sizes = [8, 239], strides = [1, 1]} : vector<8x256xf32> to vector<8x239xf32>
    %14 = vector.extract_strided_slice %12 {offsets = [0, 17], sizes = [1, 239], strides = [1, 1]} : vector<1x256xi32> to vector<1x239xi32>
    %c-1_i32 = arith.constant -1 : i32
    %15 = vector.broadcast %c-1_i32 : i32 to vector<1x239xi32>
    %16 = arith.addi %14, %15 : vector<1x239xi32>
    %c0_i32 = arith.constant 0 : i32
    %17 = vector.broadcast %c0_i32 : i32 to vector<1x239xi32>
    %18 = arith.cmpi sge, %16, %17 : vector<1x239xi32>
    %c-1_i32_11 = arith.constant -1 : i32
    %19 = vector.broadcast %c-1_i32_11 : i32 to vector<1x239xi32>
    %20 = arith.addi %14, %19 : vector<1x239xi32>
    %c16_i32 = arith.constant 16 : i32
    %21 = vector.broadcast %c16_i32 : i32 to vector<1x239xi32>
    %22 = arith.cmpi slt, %20, %21 : vector<1x239xi32>
    %23 = arith.andi %18, %22 : vector<1x239xi1>
    %cst_12 = arith.constant 0.000000e+00 : f32
    %24 = vector.shape_cast %23 : vector<1x239xi1> to vector<1x239xi1>
    %25 = vector.broadcast %24 : vector<1x239xi1> to vector<8x239xi1>
    %26 = vector.broadcast %cst_12 : f32 to vector<8x239xf32>
    %27 = arith.select %25, %13, %26 : vector<8x239xi1>, vector<8x239xf32>
    %c0_13 = arith.constant 0 : index
    %c17 = arith.constant 17 : index
    %28 = vector.load %arg8[%c0_13, %c17] : memref<72x256xf32, #tpu.memory_space<vmem>>, vector<8x239xf32>
    tpu.vector_store %arg8[%c0_13, %c17], %27 {strides = array<i32>} : memref<72x256xf32, #tpu.memory_space<vmem>>, vector<8x239xf32>,
    %29 = vector.extract_strided_slice %9 {offsets = [0, 0], sizes = [8, 240], strides = [1, 1]} : vector<8x256xf32> to vector<8x240xf32>
    %c8 = arith.constant 8 : index
    %c16 = arith.constant 16 : index
    %30 = vector.load %arg8[%c8, %c16] : memref<72x256xf32, #tpu.memory_space<vmem>>, vector<8x240xf32>
    tpu.vector_store %arg8[%c8, %c16], %29 {strides = array<i32>} : memref<72x256xf32, #tpu.memory_space<vmem>>, vector<8x240xf32>,
    %31 = vector.extract_strided_slice %9 {offsets = [0, 0], sizes = [8, 241], strides = [1, 1]} : vector<8x256xf32> to vector<8x241xf32>
    %32 = vector.extract_strided_slice %12 {offsets = [0, 15], sizes = [1, 241], strides = [1, 1]} : vector<1x256xi32> to vector<1x241xi32>
    %c1_i32 = arith.constant 1 : i32
    %33 = vector.broadcast %c1_i32 : i32 to vector<1x241xi32>
    %34 = arith.addi %32, %33 : vector<1x241xi32>
    %c0_i32_14 = arith.constant 0 : i32
    %35 = vector.broadcast %c0_i32_14 : i32 to vector<1x241xi32>
    %36 = arith.cmpi sge, %34, %35 : vector<1x241xi32>
    %c1_i32_15 = arith.constant 1 : i32
    %37 = vector.broadcast %c1_i32_15 : i32 to vector<1x241xi32>
    %38 = arith.addi %32, %37 : vector<1x241xi32>
    %c16_i32_16 = arith.constant 16 : i32
    %39 = vector.broadcast %c16_i32_16 : i32 to vector<1x241xi32>
    %40 = arith.cmpi slt, %38, %39 : vector<1x241xi32>
    %41 = arith.andi %36, %40 : vector<1x241xi1>
    %cst_17 = arith.constant 0.000000e+00 : f32
    %42 = vector.shape_cast %41 : vector<1x241xi1> to vector<1x241xi1>
    %43 = vector.broadcast %42 : vector<1x241xi1> to vector<8x241xi1>
    %44 = vector.broadcast %cst_17 : f32 to vector<8x241xf32>
    %45 = arith.select %43, %31, %44 : vector<8x241xi1>, vector<8x241xf32>
    %c16_18 = arith.constant 16 : index
    %c15 = arith.constant 15 : index
    %46 = vector.load %arg8[%c16_18, %c15] : memref<72x256xf32, #tpu.memory_space<vmem>>, vector<8x241xf32>
    tpu.vector_store %arg8[%c16_18, %c15], %45 {strides = array<i32>} : memref<72x256xf32, #tpu.memory_space<vmem>>, vector<8x241xf32>,
    %47 = vector.extract_strided_slice %9 {offsets = [0, 0], sizes = [8, 255], strides = [1, 1]} : vector<8x256xf32> to vector<8x255xf32>
    %48 = vector.extract_strided_slice %12 {offsets = [0, 1], sizes = [1, 255], strides = [1, 1]} : vector<1x256xi32> to vector<1x255xi32>
    %c-1_i32_19 = arith.constant -1 : i32
    %49 = vector.broadcast %c-1_i32_19 : i32 to vector<1x255xi32>
    %50 = arith.addi %48, %49 : vector<1x255xi32>
    %c0_i32_20 = arith.constant 0 : i32
    %51 = vector.broadcast %c0_i32_20 : i32 to vector<1x255xi32>
    %52 = arith.cmpi sge, %50, %51 : vector<1x255xi32>
    %c-1_i32_21 = arith.constant -1 : i32
    %53 = vector.broadcast %c-1_i32_21 : i32 to vector<1x255xi32>
    %54 = arith.addi %48, %53 : vector<1x255xi32>
    %c16_i32_22 = arith.constant 16 : i32
    %55 = vector.broadcast %c16_i32_22 : i32 to vector<1x255xi32>
    %56 = arith.cmpi slt, %54, %55 : vector<1x255xi32>
    %57 = arith.andi %52, %56 : vector<1x255xi1>
    %cst_23 = arith.constant 0.000000e+00 : f32
    %58 = vector.shape_cast %57 : vector<1x255xi1> to vector<1x255xi1>
    %59 = vector.broadcast %58 : vector<1x255xi1> to vector<8x255xi1>
    %60 = vector.broadcast %cst_23 : f32 to vector<8x255xf32>
    %61 = arith.select %59, %47, %60 : vector<8x255xi1>, vector<8x255xf32>
    %c24 = arith.constant 24 : index
    %c1 = arith.constant 1 : index
    %62 = vector.load %arg8[%c24, %c1] : memref<72x256xf32, #tpu.memory_space<vmem>>, vector<8x255xf32>
    tpu.vector_store %arg8[%c24, %c1], %61 {strides = array<i32>} : memref<72x256xf32, #tpu.memory_space<vmem>>, vector<8x255xf32>,
    %c32 = arith.constant 32 : index
    %c0_24 = arith.constant 0 : index
    %63 = vector.load %arg8[%c32, %c0_24] : memref<72x256xf32, #tpu.memory_space<vmem>>, vector<8x256xf32>
    tpu.vector_store %arg8[%c32, %c0_24], %9 {strides = array<i32>} : memref<72x256xf32, #tpu.memory_space<vmem>>, vector<8x256xf32>,
    %64 = vector.extract_strided_slice %9 {offsets = [0, 1], sizes = [8, 255], strides = [1, 1]} : vector<8x256xf32> to vector<8x255xf32>
    %65 = vector.extract_strided_slice %12 {offsets = [0, 0], sizes = [1, 255], strides = [1, 1]} : vector<1x256xi32> to vector<1x255xi32>
    %c1_i32_25 = arith.constant 1 : i32
    %66 = vector.broadcast %c1_i32_25 : i32 to vector<1x255xi32>
    %67 = arith.addi %65, %66 : vector<1x255xi32>
    %c0_i32_26 = arith.constant 0 : i32
    %68 = vector.broadcast %c0_i32_26 : i32 to vector<1x255xi32>
    %69 = arith.cmpi sge, %67, %68 : vector<1x255xi32>
    %c1_i32_27 = arith.constant 1 : i32
    %70 = vector.broadcast %c1_i32_27 : i32 to vector<1x255xi32>
    %71 = arith.addi %65, %70 : vector<1x255xi32>
    %c16_i32_28 = arith.constant 16 : i32
    %72 = vector.broadcast %c16_i32_28 : i32 to vector<1x255xi32>
    %73 = arith.cmpi slt, %71, %72 : vector<1x255xi32>
    %74 = arith.andi %69, %73 : vector<1x255xi1>
    %cst_29 = arith.constant 0.000000e+00 : f32
    %75 = vector.shape_cast %74 : vector<1x255xi1> to vector<1x255xi1>
    %76 = vector.broadcast %75 : vector<1x255xi1> to vector<8x255xi1>
    %77 = vector.broadcast %cst_29 : f32 to vector<8x255xf32>
    %78 = arith.select %76, %64, %77 : vector<8x255xi1>, vector<8x255xf32>
    %c40 = arith.constant 40 : index
    %c0_30 = arith.constant 0 : index
    %79 = vector.load %arg8[%c40, %c0_30] : memref<72x256xf32, #tpu.memory_space<vmem>>, vector<8x255xf32>
    tpu.vector_store %arg8[%c40, %c0_30], %78 {strides = array<i32>} : memref<72x256xf32, #tpu.memory_space<vmem>>, vector<8x255xf32>,
    %80 = vector.extract_strided_slice %9 {offsets = [0, 15], sizes = [8, 241], strides = [1, 1]} : vector<8x256xf32> to vector<8x241xf32>
    %81 = vector.extract_strided_slice %12 {offsets = [0, 0], sizes = [1, 241], strides = [1, 1]} : vector<1x256xi32> to vector<1x241xi32>
    %c-1_i32_31 = arith.constant -1 : i32
    %82 = vector.broadcast %c-1_i32_31 : i32 to vector<1x241xi32>
    %83 = arith.addi %81, %82 : vector<1x241xi32>
    %c0_i32_32 = arith.constant 0 : i32
    %84 = vector.broadcast %c0_i32_32 : i32 to vector<1x241xi32>
    %85 = arith.cmpi sge, %83, %84 : vector<1x241xi32>
    %c-1_i32_33 = arith.constant -1 : i32
    %86 = vector.broadcast %c-1_i32_33 : i32 to vector<1x241xi32>
    %87 = arith.addi %81, %86 : vector<1x241xi32>
    %c16_i32_34 = arith.constant 16 : i32
    %88 = vector.broadcast %c16_i32_34 : i32 to vector<1x241xi32>
    %89 = arith.cmpi slt, %87, %88 : vector<1x241xi32>
    %90 = arith.andi %85, %89 : vector<1x241xi1>
    %cst_35 = arith.constant 0.000000e+00 : f32
    %91 = vector.shape_cast %90 : vector<1x241xi1> to vector<1x241xi1>
    %92 = vector.broadcast %91 : vector<1x241xi1> to vector<8x241xi1>
    %93 = vector.broadcast %cst_35 : f32 to vector<8x241xf32>
    %94 = arith.select %92, %80, %93 : vector<8x241xi1>, vector<8x241xf32>
    %c48 = arith.constant 48 : index
    %c0_36 = arith.constant 0 : index
    %95 = vector.load %arg8[%c48, %c0_36] : memref<72x256xf32, #tpu.memory_space<vmem>>, vector<8x241xf32>
    tpu.vector_store %arg8[%c48, %c0_36], %94 {strides = array<i32>} : memref<72x256xf32, #tpu.memory_space<vmem>>, vector<8x241xf32>,
    %96 = vector.extract_strided_slice %9 {offsets = [0, 16], sizes = [8, 240], strides = [1, 1]} : vector<8x256xf32> to vector<8x240xf32>
    %c56 = arith.constant 56 : index
    %c0_37 = arith.constant 0 : index
    %97 = vector.load %arg8[%c56, %c0_37] : memref<72x256xf32, #tpu.memory_space<vmem>>, vector<8x240xf32>
    tpu.vector_store %arg8[%c56, %c0_37], %96 {strides = array<i32>} : memref<72x256xf32, #tpu.memory_space<vmem>>, vector<8x240xf32>,
    %98 = vector.extract_strided_slice %9 {offsets = [0, 17], sizes = [8, 239], strides = [1, 1]} : vector<8x256xf32> to vector<8x239xf32>
    %99 = vector.extract_strided_slice %12 {offsets = [0, 0], sizes = [1, 239], strides = [1, 1]} : vector<1x256xi32> to vector<1x239xi32>
    %c1_i32_38 = arith.constant 1 : i32
    %100 = vector.broadcast %c1_i32_38 : i32 to vector<1x239xi32>
    %101 = arith.addi %99, %100 : vector<1x239xi32>
    %c0_i32_39 = arith.constant 0 : i32
    %102 = vector.broadcast %c0_i32_39 : i32 to vector<1x239xi32>
    %103 = arith.cmpi sge, %101, %102 : vector<1x239xi32>
    %c1_i32_40 = arith.constant 1 : i32
    %104 = vector.broadcast %c1_i32_40 : i32 to vector<1x239xi32>
    %105 = arith.addi %99, %104 : vector<1x239xi32>
    %c16_i32_41 = arith.constant 16 : i32
    %106 = vector.broadcast %c16_i32_41 : i32 to vector<1x239xi32>
    %107 = arith.cmpi slt, %105, %106 : vector<1x239xi32>
    %108 = arith.andi %103, %107 : vector<1x239xi1>
    %cst_42 = arith.constant 0.000000e+00 : f32
    %109 = vector.shape_cast %108 : vector<1x239xi1> to vector<1x239xi1>
    %110 = vector.broadcast %109 : vector<1x239xi1> to vector<8x239xi1>
    %111 = vector.broadcast %cst_42 : f32 to vector<8x239xf32>
    %112 = arith.select %110, %98, %111 : vector<8x239xi1>, vector<8x239xf32>
    %c64 = arith.constant 64 : index
    %c0_43 = arith.constant 0 : index
    %113 = vector.load %arg8[%c64, %c0_43] : memref<72x256xf32, #tpu.memory_space<vmem>>, vector<8x239xf32>
    tpu.vector_store %arg8[%c64, %c0_43], %112 {strides = array<i32>} : memref<72x256xf32, #tpu.memory_space<vmem>>, vector<8x239xf32>,
    %c0_44 = arith.constant 0 : index
    %c0_45 = arith.constant 0 : index
    %114 = vector.load %arg8[%c0_44, %c0_45] : memref<72x256xf32, #tpu.memory_space<vmem>>, vector<72x256xf32>
    %115 = arith.truncf %114 : vector<72x256xf32> to vector<72x256xbf16>
    %c0_46 = arith.constant 0 : index
    %c0_47 = arith.constant 0 : index
    %116 = vector.load %arg4[%c0_46, %c0_47] : memref<8x72xbf16, #tpu.memory_space<vmem>>, vector<8x72xbf16>
    %cst_48 = arith.constant dense<0.000000e+00> : vector<8x256xf32>
    %117 = tpu.matmul %116, %115, %cst_48 {dimension_numbers = #tpu.dot_dimension_numbers<[1], [0], [0], [1], [0, 0, 1, 1], [], []>} : vector<8x72xbf16>, vector<72x256xbf16>, vector<8x256xf32> -> vector<8x256xf32>
    %c0_49 = arith.constant 0 : index
    %c0_50 = arith.constant 0 : index
    %118 = vector.load %arg5[%c0_49, %c0_50] : memref<8x1xf32, #tpu.memory_space<vmem>>, vector<8x1xf32>
    %119 = vector.broadcast %118 : vector<8x1xf32> to vector<8x256xf32>
    %120 = arith.addf %117, %119 : vector<8x256xf32>
    %c0_51 = arith.constant 0 : index
    %c0_52 = arith.constant 0 : index
    %c0_53 = arith.constant 0 : index
    %121 = vector.load %arg7[%c0_51, %c0_52, %c0_53] : memref<1x8x256xf32, #tpu.memory_space<vmem>>, vector<1x8x256xf32>
    %122 = vector.shape_cast %121 : vector<1x8x256xf32> to vector<8x256xf32>
    %123 = vector.shape_cast %120 : vector<8x256xf32> to vector<1x8x256xf32>
    tpu.vector_store %arg7[%c0_51, %c0_52, %c0_53], %123 {strides = array<i32>} : memref<1x8x256xf32, #tpu.memory_space<vmem>>, vector<1x8x256xf32>,
    return
  }
  func.func @transform_0(%arg0: i32) -> (i32, i32, i32) {
    %c0_i32 = arith.constant 0 : i32
    %c0_i32_0 = arith.constant 0 : i32
    %c0_i32_1 = arith.constant 0 : i32
    return %arg0, %c0_i32, %c0_i32_0 : i32, i32, i32
  }
  func.func @transform_1(%arg0: i32) -> (i32, i32) {
    %c0_i32 = arith.constant 0 : i32
    %c0_i32_0 = arith.constant 0 : i32
    %c0_i32_1 = arith.constant 0 : i32
    return %c0_i32, %c0_i32_0 : i32, i32
  }
  func.func @transform_2(%arg0: i32) -> (i32, i32) {
    %c0_i32 = arith.constant 0 : i32
    %c0_i32_0 = arith.constant 0 : i32
    %c0_i32_1 = arith.constant 0 : i32
    return %c0_i32, %c0_i32_0 : i32, i32
  }
  func.func @transform_3(%arg0: i32) -> (i32, i32) {
    %c0_i32 = arith.constant 0 : i32
    %c0_i32_0 = arith.constant 0 : i32
    %c0_i32_1 = arith.constant 0 : i32
    return %c0_i32, %c0_i32_0 : i32, i32
  }
  func.func @transform_4(%arg0: i32) -> (i32, i32) {
    %c0_i32 = arith.constant 0 : i32
    %c0_i32_0 = arith.constant 0 : i32
    %c0_i32_1 = arith.constant 0 : i32
    return %c0_i32, %c0_i32_0 : i32, i32
  }
  func.func @transform_5(%arg0: i32) -> (i32, i32) {
    %c0_i32 = arith.constant 0 : i32
    %c0_i32_0 = arith.constant 0 : i32
    %c0_i32_1 = arith.constant 0 : i32
    return %c0_i32, %c0_i32_0 : i32, i32
  }
  func.func @transform_6(%arg0: i32) -> (i32, i32, i32) {
    %c1_i32 = arith.constant 1 : i32
    %c0_i32 = arith.constant 0 : i32
    %c0_i32_0 = arith.constant 0 : i32
    return %arg0, %c1_i32, %c0_i32 : i32, i32, i32
  }
}

module attributes {stable_mosaic.version = 11 : i64} {
  func.func @_bn_sums_kernel(%arg0: i32, %arg1: i32, %arg2: memref<1x16x256xf32, #tpu.memory_space<vmem>>, %arg3: memref<16x1xf32, #tpu.memory_space<vmem>>, %arg4: memref<16x1xf32, #tpu.memory_space<vmem>>) attributes {dimension_semantics = [#tpu.dimension_semantics<arbitrary>, #tpu.dimension_semantics<arbitrary>], iteration_bounds = array<i64: 2, 1>, scalar_prefetch = 0 : i64, scratch_operands = 0 : i64, tpu.core_type = #tpu.core_type<tc>, window_params = [{transform_indices = @transform_0, window_bounds = array<i64: 1, 16, 256>}, {pipeline_mode = #tpu.pipeline_mode<synchronous>, transform_indices = @transform_1, window_bounds = array<i64: 16, 1>}, {pipeline_mode = #tpu.pipeline_mode<synchronous>, transform_indices = @transform_2, window_bounds = array<i64: 16, 1>}]} {
    %c0_i32 = arith.constant 0 : i32
    %0 = arith.cmpi eq, %arg0, %c0_i32 : i32
    %c0_i32_0 = arith.constant 0 : i32
    %1 = arith.cmpi eq, %arg1, %c0_i32_0 : i32
    %2 = arith.andi %0, %1 : i1
    %3 = arith.extui %2 : i1 to i32
    %c0_i32_1 = arith.constant 0 : i32
    %4 = arith.cmpi ne, %3, %c0_i32_1 : i32
    scf.if %4 {
      %cst_13 = arith.constant 0.000000e+00 : f32
      %18 = vector.broadcast %cst_13 : f32 to vector<16x1xf32>
      %c0_14 = arith.constant 0 : index
      %c0_15 = arith.constant 0 : index
      %19 = vector.load %arg3[%c0_14, %c0_15] : memref<16x1xf32, #tpu.memory_space<vmem>>, vector<16x1xf32>
      tpu.vector_store %arg3[%c0_14, %c0_15], %18 {strides = array<i32>} : memref<16x1xf32, #tpu.memory_space<vmem>>, vector<16x1xf32>,
      %cst_16 = arith.constant 0.000000e+00 : f32
      %20 = vector.broadcast %cst_16 : f32 to vector<16x1xf32>
      %c0_17 = arith.constant 0 : index
      %c0_18 = arith.constant 0 : index
      %21 = vector.load %arg4[%c0_17, %c0_18] : memref<16x1xf32, #tpu.memory_space<vmem>>, vector<16x1xf32>
      tpu.vector_store %arg4[%c0_17, %c0_18], %20 {strides = array<i32>} : memref<16x1xf32, #tpu.memory_space<vmem>>, vector<16x1xf32>,
    } else {
    }
    %c0 = arith.constant 0 : index
    %c0_2 = arith.constant 0 : index
    %c0_3 = arith.constant 0 : index
    %5 = vector.load %arg2[%c0, %c0_2, %c0_3] : memref<1x16x256xf32, #tpu.memory_space<vmem>>, vector<1x16x256xf32>
    %6 = vector.shape_cast %5 : vector<1x16x256xf32> to vector<16x256xf32>
    %c0_4 = arith.constant 0 : index
    %c0_5 = arith.constant 0 : index
    %7 = vector.load %arg3[%c0_4, %c0_5] : memref<16x1xf32, #tpu.memory_space<vmem>>, vector<16x1xf32>
    %cst = arith.constant dense<0.000000e+00> : vector<16xf32>
    %8 = vector.multi_reduction <add>, %6, %cst [1] : vector<16x256xf32> to vector<16xf32>
    %9 = vector.shape_cast %8 : vector<16xf32> to vector<16x1xf32>
    %10 = arith.addf %7, %9 : vector<16x1xf32>
    %c0_6 = arith.constant 0 : index
    %c0_7 = arith.constant 0 : index
    %11 = vector.load %arg3[%c0_6, %c0_7] : memref<16x1xf32, #tpu.memory_space<vmem>>, vector<16x1xf32>
    tpu.vector_store %arg3[%c0_6, %c0_7], %10 {strides = array<i32>} : memref<16x1xf32, #tpu.memory_space<vmem>>, vector<16x1xf32>,
    %c0_8 = arith.constant 0 : index
    %c0_9 = arith.constant 0 : index
    %12 = vector.load %arg4[%c0_8, %c0_9] : memref<16x1xf32, #tpu.memory_space<vmem>>, vector<16x1xf32>
    %13 = arith.mulf %6, %6 : vector<16x256xf32>
    %cst_10 = arith.constant dense<0.000000e+00> : vector<16xf32>
    %14 = vector.multi_reduction <add>, %13, %cst_10 [1] : vector<16x256xf32> to vector<16xf32>
    %15 = vector.shape_cast %14 : vector<16xf32> to vector<16x1xf32>
    %16 = arith.addf %12, %15 : vector<16x1xf32>
    %c0_11 = arith.constant 0 : index
    %c0_12 = arith.constant 0 : index
    %17 = vector.load %arg4[%c0_11, %c0_12] : memref<16x1xf32, #tpu.memory_space<vmem>>, vector<16x1xf32>
    tpu.vector_store %arg4[%c0_11, %c0_12], %16 {strides = array<i32>} : memref<16x1xf32, #tpu.memory_space<vmem>>, vector<16x1xf32>,
    return
  }
  func.func @transform_0(%arg0: i32, %arg1: i32) -> (i32, i32, i32) {
    %c0_i32 = arith.constant 0 : i32
    %c0_i32_0 = arith.constant 0 : i32
    return %arg0, %c0_i32, %arg1 : i32, i32, i32
  }
  func.func @transform_1(%arg0: i32, %arg1: i32) -> (i32, i32) {
    %c0_i32 = arith.constant 0 : i32
    %c0_i32_0 = arith.constant 0 : i32
    %c0_i32_1 = arith.constant 0 : i32
    return %c0_i32, %c0_i32_0 : i32, i32
  }
  func.func @transform_2(%arg0: i32, %arg1: i32) -> (i32, i32) {
    %c0_i32 = arith.constant 0 : i32
    %c0_i32_0 = arith.constant 0 : i32
    %c0_i32_1 = arith.constant 0 : i32
    return %c0_i32, %c0_i32_0 : i32, i32
  }
}

module attributes {stable_mosaic.version = 11 : i64} {
  func.func @_fused_bn_relu_conv3x3_kernel(%arg0: i32, %arg1: memref<1x16x256xf32, #tpu.memory_space<vmem>>, %arg2: memref<16x1xf32, #tpu.memory_space<vmem>>, %arg3: memref<16x1xf32, #tpu.memory_space<vmem>>, %arg4: memref<8x144xbf16, #tpu.memory_space<vmem>>, %arg5: memref<8x1xf32, #tpu.memory_space<vmem>>, %arg6: memref<1x256xi32, #tpu.memory_space<vmem>>, %arg7: memref<1x8x256xf32, #tpu.memory_space<vmem>>, %arg8: memref<144x256xf32, #tpu.memory_space<vmem>>) attributes {dimension_semantics = [#tpu.dimension_semantics<parallel>], iteration_bounds = array<i64: 2>, scalar_prefetch = 0 : i64, scratch_operands = 1 : i64, tpu.core_type = #tpu.core_type<tc>, window_params = [{transform_indices = @transform_0, window_bounds = array<i64: 1, 16, 256>}, {pipeline_mode = #tpu.pipeline_mode<synchronous>, transform_indices = @transform_1, window_bounds = array<i64: 16, 1>}, {pipeline_mode = #tpu.pipeline_mode<synchronous>, transform_indices = @transform_2, window_bounds = array<i64: 16, 1>}, {pipeline_mode = #tpu.pipeline_mode<synchronous>, transform_indices = @transform_3, window_bounds = array<i64: 8, 144>}, {pipeline_mode = #tpu.pipeline_mode<synchronous>, transform_indices = @transform_4, window_bounds = array<i64: 8, 1>}, {pipeline_mode = #tpu.pipeline_mode<synchronous>, transform_indices = @transform_5, window_bounds = array<i64: 1, 256>}, {transform_indices = @transform_6, window_bounds = array<i64: 1, 8, 256>}]} {
    %c0 = arith.constant 0 : index
    %c0_0 = arith.constant 0 : index
    %c0_1 = arith.constant 0 : index
    %0 = vector.load %arg1[%c0, %c0_0, %c0_1] : memref<1x16x256xf32, #tpu.memory_space<vmem>>, vector<1x16x256xf32>
    %1 = vector.shape_cast %0 : vector<1x16x256xf32> to vector<16x256xf32>
    %c0_2 = arith.constant 0 : index
    %c0_3 = arith.constant 0 : index
    %2 = vector.load %arg2[%c0_2, %c0_3] : memref<16x1xf32, #tpu.memory_space<vmem>>, vector<16x1xf32>
    %3 = vector.broadcast %2 : vector<16x1xf32> to vector<16x256xf32>
    %4 = arith.mulf %1, %3 : vector<16x256xf32>
    %c0_4 = arith.constant 0 : index
    %c0_5 = arith.constant 0 : index
    %5 = vector.load %arg3[%c0_4, %c0_5] : memref<16x1xf32, #tpu.memory_space<vmem>>, vector<16x1xf32>
    %6 = vector.broadcast %5 : vector<16x1xf32> to vector<16x256xf32>
    %7 = arith.addf %4, %6 : vector<16x256xf32>
    %cst = arith.constant 0.000000e+00 : f32
    %8 = vector.broadcast %cst : f32 to vector<16x256xf32>
    %9 = arith.maximumf %7, %8 : vector<16x256xf32>
    %cst_6 = arith.constant 0.000000e+00 : f32
    %10 = vector.broadcast %cst_6 : f32 to vector<144x256xf32>
    %c0_7 = arith.constant 0 : index
    %c0_8 = arith.constant 0 : index
    %11 = vector.load %arg8[%c0_7, %c0_8] : memref<144x256xf32, #tpu.memory_space<vmem>>, vector<144x256xf32>
    tpu.vector_store %arg8[%c0_7, %c0_8], %10 {strides = array<i32>} : memref<144x256xf32, #tpu.memory_space<vmem>>, vector<144x256xf32>,
    %c0_9 = arith.constant 0 : index
    %c0_10 = arith.constant 0 : index
    %12 = vector.load %arg6[%c0_9, %c0_10] : memref<1x256xi32, #tpu.memory_space<vmem>>, vector<1x256xi32>
    %13 = vector.extract_strided_slice %9 {offsets = [0, 0], sizes = [16, 239], strides = [1, 1]} : vector<16x256xf32> to vector<16x239xf32>
    %14 = vector.extract_strided_slice %12 {offsets = [0, 17], sizes = [1, 239], strides = [1, 1]} : vector<1x256xi32> to vector<1x239xi32>
    %c-1_i32 = arith.constant -1 : i32
    %15 = vector.broadcast %c-1_i32 : i32 to vector<1x239xi32>
    %16 = arith.addi %14, %15 : vector<1x239xi32>
    %c0_i32 = arith.constant 0 : i32
    %17 = vector.broadcast %c0_i32 : i32 to vector<1x239xi32>
    %18 = arith.cmpi sge, %16, %17 : vector<1x239xi32>
    %c-1_i32_11 = arith.constant -1 : i32
    %19 = vector.broadcast %c-1_i32_11 : i32 to vector<1x239xi32>
    %20 = arith.addi %14, %19 : vector<1x239xi32>
    %c16_i32 = arith.constant 16 : i32
    %21 = vector.broadcast %c16_i32 : i32 to vector<1x239xi32>
    %22 = arith.cmpi slt, %20, %21 : vector<1x239xi32>
    %23 = arith.andi %18, %22 : vector<1x239xi1>
    %cst_12 = arith.constant 0.000000e+00 : f32
    %24 = vector.shape_cast %23 : vector<1x239xi1> to vector<1x239xi1>
    %25 = vector.broadcast %24 : vector<1x239xi1> to vector<16x239xi1>
    %26 = vector.broadcast %cst_12 : f32 to vector<16x239xf32>
    %27 = arith.select %25, %13, %26 : vector<16x239xi1>, vector<16x239xf32>
    %c0_13 = arith.constant 0 : index
    %c17 = arith.constant 17 : index
    %28 = vector.load %arg8[%c0_13, %c17] : memref<144x256xf32, #tpu.memory_space<vmem>>, vector<16x239xf32>
    tpu.vector_store %arg8[%c0_13, %c17], %27 {strides = array<i32>} : memref<144x256xf32, #tpu.memory_space<vmem>>, vector<16x239xf32>,
    %29 = vector.extract_strided_slice %9 {offsets = [0, 0], sizes = [16, 240], strides = [1, 1]} : vector<16x256xf32> to vector<16x240xf32>
    %c16 = arith.constant 16 : index
    %c16_14 = arith.constant 16 : index
    %30 = vector.load %arg8[%c16, %c16_14] : memref<144x256xf32, #tpu.memory_space<vmem>>, vector<16x240xf32>
    tpu.vector_store %arg8[%c16, %c16_14], %29 {strides = array<i32>} : memref<144x256xf32, #tpu.memory_space<vmem>>, vector<16x240xf32>,
    %31 = vector.extract_strided_slice %9 {offsets = [0, 0], sizes = [16, 241], strides = [1, 1]} : vector<16x256xf32> to vector<16x241xf32>
    %32 = vector.extract_strided_slice %12 {offsets = [0, 15], sizes = [1, 241], strides = [1, 1]} : vector<1x256xi32> to vector<1x241xi32>
    %c1_i32 = arith.constant 1 : i32
    %33 = vector.broadcast %c1_i32 : i32 to vector<1x241xi32>
    %34 = arith.addi %32, %33 : vector<1x241xi32>
    %c0_i32_15 = arith.constant 0 : i32
    %35 = vector.broadcast %c0_i32_15 : i32 to vector<1x241xi32>
    %36 = arith.cmpi sge, %34, %35 : vector<1x241xi32>
    %c1_i32_16 = arith.constant 1 : i32
    %37 = vector.broadcast %c1_i32_16 : i32 to vector<1x241xi32>
    %38 = arith.addi %32, %37 : vector<1x241xi32>
    %c16_i32_17 = arith.constant 16 : i32
    %39 = vector.broadcast %c16_i32_17 : i32 to vector<1x241xi32>
    %40 = arith.cmpi slt, %38, %39 : vector<1x241xi32>
    %41 = arith.andi %36, %40 : vector<1x241xi1>
    %cst_18 = arith.constant 0.000000e+00 : f32
    %42 = vector.shape_cast %41 : vector<1x241xi1> to vector<1x241xi1>
    %43 = vector.broadcast %42 : vector<1x241xi1> to vector<16x241xi1>
    %44 = vector.broadcast %cst_18 : f32 to vector<16x241xf32>
    %45 = arith.select %43, %31, %44 : vector<16x241xi1>, vector<16x241xf32>
    %c32 = arith.constant 32 : index
    %c15 = arith.constant 15 : index
    %46 = vector.load %arg8[%c32, %c15] : memref<144x256xf32, #tpu.memory_space<vmem>>, vector<16x241xf32>
    tpu.vector_store %arg8[%c32, %c15], %45 {strides = array<i32>} : memref<144x256xf32, #tpu.memory_space<vmem>>, vector<16x241xf32>,
    %47 = vector.extract_strided_slice %9 {offsets = [0, 0], sizes = [16, 255], strides = [1, 1]} : vector<16x256xf32> to vector<16x255xf32>
    %48 = vector.extract_strided_slice %12 {offsets = [0, 1], sizes = [1, 255], strides = [1, 1]} : vector<1x256xi32> to vector<1x255xi32>
    %c-1_i32_19 = arith.constant -1 : i32
    %49 = vector.broadcast %c-1_i32_19 : i32 to vector<1x255xi32>
    %50 = arith.addi %48, %49 : vector<1x255xi32>
    %c0_i32_20 = arith.constant 0 : i32
    %51 = vector.broadcast %c0_i32_20 : i32 to vector<1x255xi32>
    %52 = arith.cmpi sge, %50, %51 : vector<1x255xi32>
    %c-1_i32_21 = arith.constant -1 : i32
    %53 = vector.broadcast %c-1_i32_21 : i32 to vector<1x255xi32>
    %54 = arith.addi %48, %53 : vector<1x255xi32>
    %c16_i32_22 = arith.constant 16 : i32
    %55 = vector.broadcast %c16_i32_22 : i32 to vector<1x255xi32>
    %56 = arith.cmpi slt, %54, %55 : vector<1x255xi32>
    %57 = arith.andi %52, %56 : vector<1x255xi1>
    %cst_23 = arith.constant 0.000000e+00 : f32
    %58 = vector.shape_cast %57 : vector<1x255xi1> to vector<1x255xi1>
    %59 = vector.broadcast %58 : vector<1x255xi1> to vector<16x255xi1>
    %60 = vector.broadcast %cst_23 : f32 to vector<16x255xf32>
    %61 = arith.select %59, %47, %60 : vector<16x255xi1>, vector<16x255xf32>
    %c48 = arith.constant 48 : index
    %c1 = arith.constant 1 : index
    %62 = vector.load %arg8[%c48, %c1] : memref<144x256xf32, #tpu.memory_space<vmem>>, vector<16x255xf32>
    tpu.vector_store %arg8[%c48, %c1], %61 {strides = array<i32>} : memref<144x256xf32, #tpu.memory_space<vmem>>, vector<16x255xf32>,
    %c64 = arith.constant 64 : index
    %c0_24 = arith.constant 0 : index
    %63 = vector.load %arg8[%c64, %c0_24] : memref<144x256xf32, #tpu.memory_space<vmem>>, vector<16x256xf32>
    tpu.vector_store %arg8[%c64, %c0_24], %9 {strides = array<i32>} : memref<144x256xf32, #tpu.memory_space<vmem>>, vector<16x256xf32>,
    %64 = vector.extract_strided_slice %9 {offsets = [0, 1], sizes = [16, 255], strides = [1, 1]} : vector<16x256xf32> to vector<16x255xf32>
    %65 = vector.extract_strided_slice %12 {offsets = [0, 0], sizes = [1, 255], strides = [1, 1]} : vector<1x256xi32> to vector<1x255xi32>
    %c1_i32_25 = arith.constant 1 : i32
    %66 = vector.broadcast %c1_i32_25 : i32 to vector<1x255xi32>
    %67 = arith.addi %65, %66 : vector<1x255xi32>
    %c0_i32_26 = arith.constant 0 : i32
    %68 = vector.broadcast %c0_i32_26 : i32 to vector<1x255xi32>
    %69 = arith.cmpi sge, %67, %68 : vector<1x255xi32>
    %c1_i32_27 = arith.constant 1 : i32
    %70 = vector.broadcast %c1_i32_27 : i32 to vector<1x255xi32>
    %71 = arith.addi %65, %70 : vector<1x255xi32>
    %c16_i32_28 = arith.constant 16 : i32
    %72 = vector.broadcast %c16_i32_28 : i32 to vector<1x255xi32>
    %73 = arith.cmpi slt, %71, %72 : vector<1x255xi32>
    %74 = arith.andi %69, %73 : vector<1x255xi1>
    %cst_29 = arith.constant 0.000000e+00 : f32
    %75 = vector.shape_cast %74 : vector<1x255xi1> to vector<1x255xi1>
    %76 = vector.broadcast %75 : vector<1x255xi1> to vector<16x255xi1>
    %77 = vector.broadcast %cst_29 : f32 to vector<16x255xf32>
    %78 = arith.select %76, %64, %77 : vector<16x255xi1>, vector<16x255xf32>
    %c80 = arith.constant 80 : index
    %c0_30 = arith.constant 0 : index
    %79 = vector.load %arg8[%c80, %c0_30] : memref<144x256xf32, #tpu.memory_space<vmem>>, vector<16x255xf32>
    tpu.vector_store %arg8[%c80, %c0_30], %78 {strides = array<i32>} : memref<144x256xf32, #tpu.memory_space<vmem>>, vector<16x255xf32>,
    %80 = vector.extract_strided_slice %9 {offsets = [0, 15], sizes = [16, 241], strides = [1, 1]} : vector<16x256xf32> to vector<16x241xf32>
    %81 = vector.extract_strided_slice %12 {offsets = [0, 0], sizes = [1, 241], strides = [1, 1]} : vector<1x256xi32> to vector<1x241xi32>
    %c-1_i32_31 = arith.constant -1 : i32
    %82 = vector.broadcast %c-1_i32_31 : i32 to vector<1x241xi32>
    %83 = arith.addi %81, %82 : vector<1x241xi32>
    %c0_i32_32 = arith.constant 0 : i32
    %84 = vector.broadcast %c0_i32_32 : i32 to vector<1x241xi32>
    %85 = arith.cmpi sge, %83, %84 : vector<1x241xi32>
    %c-1_i32_33 = arith.constant -1 : i32
    %86 = vector.broadcast %c-1_i32_33 : i32 to vector<1x241xi32>
    %87 = arith.addi %81, %86 : vector<1x241xi32>
    %c16_i32_34 = arith.constant 16 : i32
    %88 = vector.broadcast %c16_i32_34 : i32 to vector<1x241xi32>
    %89 = arith.cmpi slt, %87, %88 : vector<1x241xi32>
    %90 = arith.andi %85, %89 : vector<1x241xi1>
    %cst_35 = arith.constant 0.000000e+00 : f32
    %91 = vector.shape_cast %90 : vector<1x241xi1> to vector<1x241xi1>
    %92 = vector.broadcast %91 : vector<1x241xi1> to vector<16x241xi1>
    %93 = vector.broadcast %cst_35 : f32 to vector<16x241xf32>
    %94 = arith.select %92, %80, %93 : vector<16x241xi1>, vector<16x241xf32>
    %c96 = arith.constant 96 : index
    %c0_36 = arith.constant 0 : index
    %95 = vector.load %arg8[%c96, %c0_36] : memref<144x256xf32, #tpu.memory_space<vmem>>, vector<16x241xf32>
    tpu.vector_store %arg8[%c96, %c0_36], %94 {strides = array<i32>} : memref<144x256xf32, #tpu.memory_space<vmem>>, vector<16x241xf32>,
    %96 = vector.extract_strided_slice %9 {offsets = [0, 16], sizes = [16, 240], strides = [1, 1]} : vector<16x256xf32> to vector<16x240xf32>
    %c112 = arith.constant 112 : index
    %c0_37 = arith.constant 0 : index
    %97 = vector.load %arg8[%c112, %c0_37] : memref<144x256xf32, #tpu.memory_space<vmem>>, vector<16x240xf32>
    tpu.vector_store %arg8[%c112, %c0_37], %96 {strides = array<i32>} : memref<144x256xf32, #tpu.memory_space<vmem>>, vector<16x240xf32>,
    %98 = vector.extract_strided_slice %9 {offsets = [0, 17], sizes = [16, 239], strides = [1, 1]} : vector<16x256xf32> to vector<16x239xf32>
    %99 = vector.extract_strided_slice %12 {offsets = [0, 0], sizes = [1, 239], strides = [1, 1]} : vector<1x256xi32> to vector<1x239xi32>
    %c1_i32_38 = arith.constant 1 : i32
    %100 = vector.broadcast %c1_i32_38 : i32 to vector<1x239xi32>
    %101 = arith.addi %99, %100 : vector<1x239xi32>
    %c0_i32_39 = arith.constant 0 : i32
    %102 = vector.broadcast %c0_i32_39 : i32 to vector<1x239xi32>
    %103 = arith.cmpi sge, %101, %102 : vector<1x239xi32>
    %c1_i32_40 = arith.constant 1 : i32
    %104 = vector.broadcast %c1_i32_40 : i32 to vector<1x239xi32>
    %105 = arith.addi %99, %104 : vector<1x239xi32>
    %c16_i32_41 = arith.constant 16 : i32
    %106 = vector.broadcast %c16_i32_41 : i32 to vector<1x239xi32>
    %107 = arith.cmpi slt, %105, %106 : vector<1x239xi32>
    %108 = arith.andi %103, %107 : vector<1x239xi1>
    %cst_42 = arith.constant 0.000000e+00 : f32
    %109 = vector.shape_cast %108 : vector<1x239xi1> to vector<1x239xi1>
    %110 = vector.broadcast %109 : vector<1x239xi1> to vector<16x239xi1>
    %111 = vector.broadcast %cst_42 : f32 to vector<16x239xf32>
    %112 = arith.select %110, %98, %111 : vector<16x239xi1>, vector<16x239xf32>
    %c128 = arith.constant 128 : index
    %c0_43 = arith.constant 0 : index
    %113 = vector.load %arg8[%c128, %c0_43] : memref<144x256xf32, #tpu.memory_space<vmem>>, vector<16x239xf32>
    tpu.vector_store %arg8[%c128, %c0_43], %112 {strides = array<i32>} : memref<144x256xf32, #tpu.memory_space<vmem>>, vector<16x239xf32>,
    %c0_44 = arith.constant 0 : index
    %c0_45 = arith.constant 0 : index
    %114 = vector.load %arg8[%c0_44, %c0_45] : memref<144x256xf32, #tpu.memory_space<vmem>>, vector<144x256xf32>
    %115 = arith.truncf %114 : vector<144x256xf32> to vector<144x256xbf16>
    %c0_46 = arith.constant 0 : index
    %c0_47 = arith.constant 0 : index
    %116 = vector.load %arg4[%c0_46, %c0_47] : memref<8x144xbf16, #tpu.memory_space<vmem>>, vector<8x144xbf16>
    %cst_48 = arith.constant dense<0.000000e+00> : vector<8x256xf32>
    %117 = tpu.matmul %116, %115, %cst_48 {dimension_numbers = #tpu.dot_dimension_numbers<[1], [0], [0], [1], [0, 0, 1, 1], [], []>} : vector<8x144xbf16>, vector<144x256xbf16>, vector<8x256xf32> -> vector<8x256xf32>
    %c0_49 = arith.constant 0 : index
    %c0_50 = arith.constant 0 : index
    %118 = vector.load %arg5[%c0_49, %c0_50] : memref<8x1xf32, #tpu.memory_space<vmem>>, vector<8x1xf32>
    %119 = vector.broadcast %118 : vector<8x1xf32> to vector<8x256xf32>
    %120 = arith.addf %117, %119 : vector<8x256xf32>
    %c0_51 = arith.constant 0 : index
    %c0_52 = arith.constant 0 : index
    %c0_53 = arith.constant 0 : index
    %121 = vector.load %arg7[%c0_51, %c0_52, %c0_53] : memref<1x8x256xf32, #tpu.memory_space<vmem>>, vector<1x8x256xf32>
    %122 = vector.shape_cast %121 : vector<1x8x256xf32> to vector<8x256xf32>
    %123 = vector.shape_cast %120 : vector<8x256xf32> to vector<1x8x256xf32>
    tpu.vector_store %arg7[%c0_51, %c0_52, %c0_53], %123 {strides = array<i32>} : memref<1x8x256xf32, #tpu.memory_space<vmem>>, vector<1x8x256xf32>,
    return
  }
  func.func @transform_0(%arg0: i32) -> (i32, i32, i32) {
    %c0_i32 = arith.constant 0 : i32
    %c0_i32_0 = arith.constant 0 : i32
    %c0_i32_1 = arith.constant 0 : i32
    return %arg0, %c0_i32, %c0_i32_0 : i32, i32, i32
  }
  func.func @transform_1(%arg0: i32) -> (i32, i32) {
    %c0_i32 = arith.constant 0 : i32
    %c0_i32_0 = arith.constant 0 : i32
    %c0_i32_1 = arith.constant 0 : i32
    return %c0_i32, %c0_i32_0 : i32, i32
  }
  func.func @transform_2(%arg0: i32) -> (i32, i32) {
    %c0_i32 = arith.constant 0 : i32
    %c0_i32_0 = arith.constant 0 : i32
    %c0_i32_1 = arith.constant 0 : i32
    return %c0_i32, %c0_i32_0 : i32, i32
  }
  func.func @transform_3(%arg0: i32) -> (i32, i32) {
    %c0_i32 = arith.constant 0 : i32
    %c0_i32_0 = arith.constant 0 : i32
    %c0_i32_1 = arith.constant 0 : i32
    return %c0_i32, %c0_i32_0 : i32, i32
  }
  func.func @transform_4(%arg0: i32) -> (i32, i32) {
    %c0_i32 = arith.constant 0 : i32
    %c0_i32_0 = arith.constant 0 : i32
    %c0_i32_1 = arith.constant 0 : i32
    return %c0_i32, %c0_i32_0 : i32, i32
  }
  func.func @transform_5(%arg0: i32) -> (i32, i32) {
    %c0_i32 = arith.constant 0 : i32
    %c0_i32_0 = arith.constant 0 : i32
    %c0_i32_1 = arith.constant 0 : i32
    return %c0_i32, %c0_i32_0 : i32, i32
  }
  func.func @transform_6(%arg0: i32) -> (i32, i32, i32) {
    %c2_i32 = arith.constant 2 : i32
    %c0_i32 = arith.constant 0 : i32
    %c0_i32_0 = arith.constant 0 : i32
    return %arg0, %c2_i32, %c0_i32 : i32, i32, i32
  }
}

</mosaic_0001>

<bundles_post_ra>
// kernel: densenet_forward.4
= control target key start
LH: loop header
LB: loop body
LE: loop exit
PB: predicated region body
PF: predicated region fallthrough
CT: control target
= control target key end

     0   :  { %s304_s9 = smov 0   ;;  %s306_s10 = smov 0   ;;  %s352_s0 = inlined_call_operand.vmem [shape: f32[2,24,256], index: 0, kind: input, shape index: {}]   ;;  %s353_s1 = inlined_call_operand.vmem [shape: f32[8,1], index: 1, kind: output, shape index: {0}]   ;;  %s354_s2 = inlined_call_operand.vmem [shape: f32[8,1], index: 2, kind: output, shape index: {1}]  }
   0x1   :  { %s308_s11 = smov 0  }
   0x2 LB: > { %s25_s12 = sadd.s32 1, %s282_s10  ;;  %p232_p0 = scmp.ge.s32.totalorder %s286_s11, 1  ;;  %s286_s11 = sphi %s308_s11, %s13_s11   ;;  %s282_s10 = sphi %s306_s10, %s356_s10   ;;  %s278_s9 = sphi %s304_s9, %s355_s9  }
   0x3   : > { %p27_p1 = scmp.ge.s32.totalorder %s25_s12, 2  ;;  %p124_p2 = scmp.lt.s32.totalorder %s286_s11, 3 }
   0x5   : > { %s358_s12 = smov (%p27_p1, %s25_s12), 0  ;;  %p125_p3 = pnand %p232_p0, %p124_p2 }
   0x6   : > { %p146_p4 = scmp.lt.s32.totalorder (!%p125_p3), %s278_s9, 1  ;;  %p155_p5 = scmp.eq.s32.totalorder (!%p125_p3), %s278_s9, 0 }
   0x7   : > { %128 = sbr.rel (%p125_p3) target bundleno = 173 (0xad), region = 24 }
   0xe   : > { %s360_s9 = smov (!%p146_p4, %s278_s9), 1  ;;  %160 = sbr.rel (!%p155_p5) target bundleno = 21 (0x15), region = 28 }
   0xf   : > { %s238_s13 = smul.u32 48, %s360_s9  ;;  %vm161_vm0 = vcmask (%p155_p5), 7168   ;;  %v288_v0 = vmov (%p155_p5), 0.0  }
  0x10   : > { %162 = vst.msk [vmem:[%s353_s1] sm:$0xff] (%p155_p5), %vm161_vm0, %v288_v0  ;;  %163 = vst.msk [vmem:[%s354_s2] sm:$0xff] (%p155_p5), %vm161_vm0, %v288_v0 }
  0x11   : > { %s153_s16 = scalar_lea.vmem %s352_s0, %s238_s13 }
  0x15 PF: > { %v164_v1 = vld [vmem:[%s153_s16] sm:$0xff]  ;;  %v165_v2 = vld [vmem:[%s153_s16 + $0x8] sm:$0xff]  ;;  %vm171_vm1 = vcmask 7168  }
  0x16   : > { %v167_v3 = vadd.f32 %v165_v2, %v164_v1  ;;  %v174_v4 = vmul.f32 %v164_v1, %v164_v1  ;;  %v175_v5 = vmul.f32 %v165_v2, %v165_v2 }
  0x17   : > { %v166_v7 = vld [vmem:[%s353_s1] sm:$0xff] }
  0x18   : > { %168 = vadd.xlane.f32.xlu0 %v167_v3  ;;  %v176_v6 = vadd.f32 %v175_v5, %v174_v4  ;;  %v173_v10 = vld [vmem:[%s354_s2] sm:$0xff] }
  0x1c   : > { %177 = vadd.xlane.f32.xlu0 %v176_v6 }
  0xa5   : > { %v169_v8 = vpop.xlane.xlu0 %168 }
  0xa6   : > { %v170_v9 = vadd.f32 %v169_v8, %v166_v7 }
  0xa8   : > { %172 = vst.msk [vmem:[%s353_s1] sm:$0xff] %vm171_vm1, %v170_v9 }
  0xa9   : > { %v178_v11 = vpop.xlane.xlu0 %177 }
  0xaa   : > { %v179_v12 = vadd.f32 %v178_v11, %v173_v10 }
  0xac   : > { %180 = vst.msk [vmem:[%s354_s2] sm:$0xff] %vm171_vm1, %v179_v12 }
  0xad PF: > { %s13_s11 = sadd.s32 1, %s286_s11   ;;  %s355_s9 = smov %s282_s10 }
  0xae   : > { %p10_p6 = scmp.ge.s32.totalorder %s13_s11, 4   ;;  %s356_s10 = smov %s358_s12 }
  0xb0   :  { %12 = sbr.rel (!%p10_p6) target bundleno = 2 (0x2), region = 62 }

// kernel: densenet_forward.6
= control target key start
LH: loop header
LB: loop body
LE: loop exit
PB: predicated region body
PF: predicated region fallthrough
CT: control target
= control target key end

     0   :  { %s322_s9 = smov 0   ;;  %s324_s10 = smov 0   ;;  %s388_s0 = inlined_call_operand.vmem [shape: f32[2,24,256], index: 0, kind: input, shape index: {}]   ;;  %s389_s1 = inlined_call_operand.vmem [shape: f32[16,1], index: 1, kind: output, shape index: {0}]   ;;  %s390_s2 = inlined_call_operand.vmem [shape: f32[16,1], index: 2, kind: output, shape index: {1}]  }
   0x1   :  { %s326_s11 = smov 0  }
   0x2 LB: > { %s25_s12 = sadd.s32 1, %s300_s10  ;;  %p250_p0 = scmp.ge.s32.totalorder %s304_s11, 1  ;;  %s304_s11 = sphi %s326_s11, %s13_s11   ;;  %s300_s10 = sphi %s324_s10, %s392_s10   ;;  %s296_s9 = sphi %s322_s9, %s391_s9  }
   0x3   : > { %p27_p1 = scmp.ge.s32.totalorder %s25_s12, 2  ;;  %p124_p2 = scmp.lt.s32.totalorder %s304_s11, 3 }
   0x5   : > { %s394_s12 = smov (%p27_p1, %s25_s12), 0  ;;  %p125_p3 = pnand %p250_p0, %p124_p2 }
   0x6   : > { %p146_p4 = scmp.lt.s32.totalorder (!%p125_p3), %s296_s9, 1  ;;  %p155_p5 = scmp.eq.s32.totalorder (!%p125_p3), %s296_s9, 0 }
   0x7   : > { %128 = sbr.rel (%p125_p3) target bundleno = 175 (0xaf), region = 24 }
   0xe   : > { %s396_s9 = smov (!%p146_p4, %s296_s9), 1  ;;  %160 = sbr.rel (!%p155_p5) target bundleno = 21 (0x15), region = 28 }
   0xf   : > { %s256_s13 = smul.u32 48, %s396_s9  ;;  %vm161_vm0 = vcmask (%p155_p5), 7168   ;;  %v306_v0 = vmov (%p155_p5), 0.0  }
  0x10   : > { %162 = vst.msk [vmem:[%s389_s1] sm:$0xff] (%p155_p5), %vm161_vm0, %v306_v0  ;;  %163 = vst.msk [vmem:[%s389_s1 + $0x8] sm:$0xff] (%p155_p5), %vm161_vm0, %v306_v0 }
  0x11   : > { %s153_s16 = scalar_lea.vmem %s388_s0, %s256_s13  ;;  %164 = vst.msk [vmem:[%s390_s2] sm:$0xff] (%p155_p5), %vm161_vm0, %v306_v0  ;;  %165 = vst.msk [vmem:[%s390_s2 + $0x8] sm:$0xff] (%p155_p5), %vm161_vm0, %v306_v0 }
  0x15 PF: > { %v166_v1 = vld [vmem:[%s153_s16] sm:$0xff]  ;;  %v167_v2 = vld [vmem:[%s153_s16 + $0x8] sm:$0xff]  ;;  %v168_v3 = vld [vmem:[%s153_s16 + $0x10] sm:$0xff]  ;;  %vm180_vm1 = vcmask 7168  }
  0x16   : > { %v185_v4 = vmul.f32 %v166_v1, %v166_v1  ;;  %v186_v5 = vmul.f32 %v167_v2, %v167_v2  ;;  %v172_v6 = vadd.f32 %v167_v2, %v166_v1  ;;  %v169_v7 = vld [vmem:[%s153_s16 + $0x18] sm:$0xff]  ;;  %v187_v8 = vmul.f32 %v168_v3, %v168_v3 }
  0x17   : > { %v188_v9 = vmul.f32 %v169_v7, %v169_v7  ;;  %v175_v11 = vadd.f32 %v169_v7, %v168_v3  ;;  %v170_v13 = vld [vmem:[%s389_s1] sm:$0xff]  ;;  %v171_v18 = vld [vmem:[%s389_s1 + $0x8] sm:$0xff] }
  0x18   : > { %v189_v10 = vadd.f32 %v186_v5, %v185_v4  ;;  %173 = vadd.xlane.f32.xlu0 %v172_v6  ;;  %v183_v14 = vld [vmem:[%s390_s2] sm:$0xff]  ;;  %v184_v20 = vld [vmem:[%s390_s2 + $0x8] sm:$0xff] }
  0x19   : > { %v192_v12 = vadd.f32 %v188_v9, %v187_v8 }
  0x1a   : > { %190 = vadd.xlane.f32.xlu1 %v189_v10 }
  0x1c   : > { %176 = vadd.xlane.f32.xlu0 %v175_v11 }
  0x1e   : > { %193 = vadd.xlane.f32.xlu1 %v192_v12 }
  0xa5   : > { %v174_v15 = vpop.xlane.xlu0 %173 }
  0xa6   : > { %v178_v16 = vadd.f32 %v174_v15, %v170_v13 }
  0xa7   : > { %v191_v17 = vpop.xlane.xlu1 %190 }
  0xa8   : > { %v195_v19 = vadd.f32 %v191_v17, %v183_v14  ;;  %181 = vst.msk [vmem:[%s389_s1] sm:$0xff] %vm180_vm1, %v178_v16 }
  0xa9   : > { %v177_v21 = vpop.xlane.xlu0 %176 }
  0xaa   : > { %197 = vst.msk [vmem:[%s390_s2] sm:$0xff] %vm180_vm1, %v195_v19  ;;  %v179_v22 = vadd.f32 %v177_v21, %v171_v18 }
  0xab   : > { %v194_v23 = vpop.xlane.xlu1 %193 }
  0xac   : > { %v196_v24 = vadd.f32 %v194_v23, %v184_v20  ;;  %182 = vst.msk [vmem:[%s389_s1 + $0x8] sm:$0xff] %vm180_vm1, %v179_v22 }
  0xae   : > { %198 = vst.msk [vmem:[%s390_s2 + $0x8] sm:$0xff] %vm180_vm1, %v196_v24 }
  0xaf PF: > { %s13_s11 = sadd.s32 1, %s304_s11   ;;  %s391_s9 = smov %s300_s10 }
  0xb0   : > { %p10_p6 = scmp.ge.s32.totalorder %s13_s11, 4   ;;  %s392_s10 = smov %s394_s12 }
  0xb2   :  { %12 = sbr.rel (!%p10_p6) target bundleno = 2 (0x2), region = 62 }

// kernel: densenet_forward.5
= control target key start
LH: loop header
LB: loop body
LE: loop exit
PB: predicated region body
PF: predicated region fallthrough
CT: control target
= control target key end

     0   :  { %s677_s21 = smov 0   ;;  %s769_s0 = inlined_call_operand.vmem [shape: f32[2,24,256], index: 0, kind: input, shape index: {}, may-alias: {0,6}]   ;;  %s770_s1 = inlined_call_operand.vmem [shape: f32[8,1], index: 1, kind: input, shape index: {}]   ;;  %s771_s2 = inlined_call_operand.vmem [shape: f32[8,1], index: 2, kind: input, shape index: {}]   ;;  %s772_s3 = inlined_call_operand.vmem [shape: bf16[8,72], index: 3, kind: input, shape index: {}]   ;;  %s773_s4 = inlined_call_operand.vmem [shape: f32[8,1], index: 4, kind: input, shape index: {}]   ;;  %s774_s5 = inlined_call_operand.vmem [shape: s32[1,256], index: 5, kind: input, shape index: {}]   ;;  %s775_s6 = inlined_call_operand.vmem [shape: f32[2,24,256], index: 6, kind: output, shape index: {}, may-alias: {0,6}]  }
   0x1 LB: > { %s578_s22 = sadd.s32 4294967295, %s629_s21   ;;  %p582_p0 = scmp.ge.s32.totalorder %s629_s21, 1  ;;  %s629_s21 = sphi %s677_s21, %s16_s21  }
   0x2   : > { %p212_p1 = scmp.lt.s32.totalorder %s629_s21, 3 }
   0x4   : > { %p213_p2 = pnand %p582_p0, %p212_p1 }
   0x5   : > { %v257_v0 = vld [vmem:[%s770_s1] sm:$0xff] (!%p213_p2)  ;;  %v631_v1 = vmov (!%p213_p2), 0   ;;  %v632_v3 = vmov (!%p213_p2), 0.0   ;;  %p243_p3 = scmp.lt.s32.totalorder (!%p213_p2), %s578_s22, 1  ;;  %s633_s7 = smov (!%p213_p2), 16   ;;  %v299_v17 = vlaneseq (!%p213_p2)  ;;  %vm332_vm6 = vcmask (!%p213_p2), 1047680  }
   0x6   : > { %216 = sbr.rel (%p213_p2) target bundleno = 521 (0x209), region = 44  ;;  %610 = vset.pattern.permute.xlu0 (!%p213_p2), %v631_v1  ;;  %502 = vmatprep.mubr.bf16.mxu0 (!%p213_p2), %v631_v1  ;;  %v265_v2 = vld [vmem:[%s771_s2] sm:$0xff] (!%p213_p2)  ;;  %277 = vst [vmem:[#allocation2 + $0x10] sm:$0xff] (!%p213_p2), %v632_v3  ;;  %275 = vst [vmem:[#allocation2] sm:$0xff] (!%p213_p2), %v632_v3  ;;  %s634_s8 = smov (!%p213_p2), 17   ;;  %vm321_vm8 = vcmask (!%p213_p2), 1047688  }
   0x7   : > { %260 = vperm.xlu0 (!%p213_p2), %610, %v257_v0   ;;  %279 = vst [vmem:[#allocation2 + $0x20] sm:$0xff] (!%p213_p2), %v632_v3  ;;  %281 = vst [vmem:[#allocation2 + $0x30] sm:$0xff] (!%p213_p2), %v632_v3  ;;  %s635_s9 = smov (!%p213_p2), 15   ;;  %s636_s10 = smov (!%p213_p2), 1   ;;  %v453_v14 = vld [vmem:[%s773_s4] sm:$0xff] (!%p213_p2)  ;;  %v300_v19 = vshrl.u32 (!%p213_p2), %v299_v17, 7 }
   0x8   : > { %286 = vst [vmem:[#allocation2 + $0x58] sm:$0xff] (!%p213_p2), %v632_v3  ;;  %288 = vst [vmem:[#allocation2 + $0x68] sm:$0xff] (!%p213_p2), %v632_v3  ;;  %s637_s11 = smov (!%p213_p2), 127   ;;  %s638_s12 = smov (!%p213_p2), 113   ;;  %v293_v15 = vld [vmem:[%s774_s5] sm:$0x3] (!%p213_p2) }
   0x9   : > { %290 = vst [vmem:[#allocation2 + $0x78] sm:$0xff] (!%p213_p2), %v632_v3  ;;  %292 = vst [vmem:[#allocation2 + $0x88] sm:$0xff] (!%p213_p2), %v632_v3  ;;  %s639_s13 = smov (!%p213_p2), 112   ;;  %s640_s14 = smov (!%p213_p2), 111   ;;  %v294_v16 = vadd.s32 (!%p213_p2), 4294967295, %v293_v15  ;;  %v335_v18 = vadd.s32 (!%p213_p2), 1, %v293_v15 }
   0xa   : > { %v301_v20 = vsub.s32 (!%p213_p2), 0, %v300_v19  ;;  %v305_v24 = vsub.s32 (!%p213_p2), 1, %v300_v19  ;;  %vm315_vm10 = vcmask (!%p213_p2), 138240   ;;  %vm360_vm11 = vcmask (!%p213_p2), 1047672  }
   0xb   : > { %268 = vperm.xlu0 (!%p213_p2), %610, %v265_v2   ;;  %vm295_vm0 = vcmp.ge.s32.totalorder (!%p213_p2), %v294_v16, 0  ;;  %vm296_vm1 = vcmp.lt.s32.totalorder (!%p213_p2), %v294_v16, 16  ;;  %vm336_vm3 = vcmp.ge.s32.totalorder (!%p213_p2), %v335_v18, 0  ;;  %vm337_vm4 = vcmp.lt.s32.totalorder (!%p213_p2), %v335_v18, 16 }
   0xc   : > { %vm297_vm2 = vmand (!%p213_p2), %vm295_vm0, %vm296_vm1  ;;  %vm328_vm13 = vcmask (!%p213_p2), 130048   ;;  %vm373_vm14 = vcmask (!%p213_p2), 1047560   ;;  %vm354_vm15 = vcmask (!%p213_p2), 121856   ;;  %vm641_vm1 = vmmov (!%p213_p2), 1  }
   0xd   : > { %s777_s22 = smov (!%p243_p3, %s578_s22), 1  ;;  %v298_v21 = vsel %vm297_vm2, 1, %v631_v1  ;;  %vm338_vm5 = vmand %vm336_vm3, %vm337_vm4  ;;  %vm367_vm3 = vcmask 7168   ;;  %vm382_vm4 = vcmask 1039360  }
   0xe   : > { %s591_s27 = smul.u32 48, %s777_s22  ;;  %v728_v22 = vrot.slane %v298_v21, %v301_v20  ;;  %v339_v23 = vsel %vm338_vm5, 1, %v631_v1  ;;  %v306_v26 = vrot.slane %v298_v21, %v305_v24 }
   0xf   : > { %v732_v25 = vrot.slane %v339_v23, %v301_v20  ;;  %v347_v34 = vrot.slane %v339_v23, %v305_v24 }
  0x10   : > { %s247_s30 = scalar_lea.vmem %s769_s0, %s591_s27  ;;  %vm307_vm7 = vcmp.eq.s32.totalorder %v728_v22, 1  ;;  %vm308_vm12 = vcmp.eq.s32.totalorder %v306_v26, 1  ;;  %s548_s25 = scalar_lea.vmem %s775_s6, %s591_s27 }
  0x11   : > { %v255_v5 = vld [vmem:[%s247_s30] sm:$0xff]  ;;  %v256_v6 = vld [vmem:[%s247_s30 + $0x8] sm:$0xff]  ;;  %vm348_vm9 = vcmp.eq.s32.totalorder %v732_v25, 1  ;;  %vm349_vm0 = vcmp.eq.s32.totalorder %v347_v34, 1  ;;  %vm611_vm2 = vmpackc.low %vm641_vm1, %vm308_vm12 }
  0x12   : > { %vm614_vm5 = vmpackc.low %vm308_vm12, %vm349_vm0 }
  0x86   : > { %v261_v4 = vpop.permute.xlu0 %260 }
  0x87   : > { %v263_v7 = vmul.f32 %v261_v4, %v255_v5  ;;  %v264_v8 = vmul.f32 %v261_v4, %v256_v6 }
  0x8a   : > { %v269_v9 = vpop.permute.xlu0 %268 }
  0x8b   : > { %v271_v10 = vadd.f32 %v269_v9, %v263_v7  ;;  %v272_v11 = vadd.f32 %v269_v9, %v264_v8 }
  0x8d   : > { %v701_v12 = vmax.f32 %v271_v10, 0.0  ;;  %v703_v13 = vmax.f32 %v272_v11, 0.0 }
  0x8f   : > { %324 = vrot.lane.b32.xlu0 %v701_v12, %s633_s7  ;;  %311 = vrot.lane.b32.xlu1 %v701_v12, %s634_s8 }
  0x93   : > { %350 = vrot.lane.b32.xlu0 %v701_v12, %s635_s9  ;;  %313 = vrot.lane.b32.xlu1 %v703_v13, %s634_s8 }
  0x97   : > { %363 = vrot.lane.b32.xlu0 %v701_v12, %s636_s10  ;;  %326 = vrot.lane.b32.xlu1 %v703_v13, %s633_s7 }
  0x9b   : > { %378 = vrot.lane.b32.xlu0 %v701_v12, %s637_s11  ;;  %352 = vrot.lane.b32.xlu1 %v703_v13, %s635_s9 }
  0x9f   : > { %390 = vrot.lane.b32.xlu0 %v701_v12, %s638_s12  ;;  %365 = vrot.lane.b32.xlu1 %v703_v13, %s636_s10 }
  0xa3   : > { %402 = vrot.lane.b32.xlu0 %v701_v12, %s639_s13  ;;  %380 = vrot.lane.b32.xlu1 %v703_v13, %s637_s11 }
  0xa7   : > { %412 = vrot.lane.b32.xlu0 %v701_v12, %s640_s14  ;;  %392 = vrot.lane.b32.xlu1 %v703_v13, %s638_s12 }
  0xab   : > { %456 = vperm.xlu0 %610, %v453_v14   ;;  %404 = vrot.lane.b32.xlu1 %v703_v13, %s639_s13  ;;  %v452_v14 = vld [vmem:[%s772_s3] sm:$0xf] }
  0xaf   : > { %414 = vrot.lane.b32.xlu1 %v703_v13, %s640_s14 }
 0x101   : > { %v325_v27 = vpop.permute.xlu0 %324  ;;  %v312_v28 = vpop.permute.xlu1 %311 }
 0x102   : > { %333 = vst.msk [vmem:[#allocation2 + $0x10] sm:$0xff] %vm332_vm6, %v325_v27  ;;  %v319_v29 = vsel %vm307_vm7, %v312_v28, 0.0  ;;  %vm394_vm6 = vcmask 924672  }
 0x103   : > { %322 = vst.msk [vmem:[#allocation2] sm:$0xff] %vm321_vm8, %v319_v29  ;;  %vm406_vm8 = vcmask 916480  }
 0x105   : > { %v351_v30 = vpop.permute.xlu0 %350  ;;  %v314_v31 = vpop.permute.xlu1 %313 }
 0x106   : > { %v358_v32 = vsel %vm348_vm9, %v351_v30, 0.0  ;;  %v316_v33 = vsel %vm315_vm10, %v312_v28, %v314_v31  ;;  %vm416_vm10 = vcmask 908288  }
 0x107   : > { %361 = vst.msk [vmem:[#allocation2 + $0x20] sm:$0xff] %vm360_vm11, %v358_v32  ;;  %vm617_vm11 = vmpackc.low %vm348_vm9, %vm641_vm1 }
 0x109   : > { %v364_v35 = vpop.permute.xlu0 %363  ;;  %v327_v36 = vpop.permute.xlu1 %326  ;;  %v426_v37 = vld [vmem:[#allocation2 + $0x10] sm:$0xff] }
 0x10a   : > { %v371_v38 = vsel %vm307_vm7, %v364_v35, 0.0  ;;  %v329_v39 = vsel %vm328_vm13, %v325_v27, %v327_v36  ;;  %v424_v40 = vld [vmem:[#allocation2] sm:$0xff]  ;;  %vm463_vm13 = vcmask 1043456  }
 0x10b   : > { %374 = vst.msk [vmem:[#allocation2 + $0x30] sm:$0xff] %vm373_vm14, %v371_v38  ;;  %v442_v41 = vpack.c.bf16 %v426_v37, %v424_v40  ;;  %v612_v43 = vpack.c.bf16 %v329_v39, %v316_v33 }
 0x10d   : > { %v353_v42 = vpop.permute.xlu1 %352  ;;  %613 = vmatprep.subr.msk.bf16.mxu0 %vm611_vm2, %v612_v43  ;;  %v379_v45 = vpop.permute.xlu0 %378 }
 0x10e   : > { %v355_v44 = vsel %vm354_vm15, %v351_v30, %v353_v42  ;;  %471 = vmatpush1.bf16.msra.mxu0 %v442_v41  ;;  %v428_v49 = vld [vmem:[#allocation2 + $0x20] sm:$0xff] }
 0x111   : > { %v366_v46 = vpop.permute.xlu1 %365  ;;  %v391_v50 = vpop.permute.xlu0 %390 }
 0x112   : > { %v368_v47 = vsel %vm367_vm3, %v364_v35, %v366_v46  ;;  %v430_v48 = vld [vmem:[#allocation2 + $0x30] sm:$0xff] }
 0x113   : > { %v444_v52 = vpack.c.bf16 %v430_v48, %v428_v49  ;;  %v615_v55 = vpack.c.bf16 %v368_v47, %v355_v44 }
 0x115   : > { %v381_v51 = vpop.permute.xlu1 %380  ;;  %616 = vmatprep.subr.msk.bf16.mxu0 %vm614_vm5, %v615_v55  ;;  %v403_v59 = vpop.permute.xlu0 %402 }
 0x116   : > { %v383_v53 = vsel %vm382_vm4, %v379_v45, %v381_v51  ;;  %v387_v54 = vsel %vm349_vm0, %v381_v51, 0.0  ;;  %473 = vmatpush1.bf16.msra.mxu0 %v444_v52 }
 0x117   : > { %389 = vst.msk [vmem:[#allocation2 + $0x58] sm:$0xff] %vm382_vm4, %v387_v54  ;;  %v618_v4 = vpack.c.bf16 %v383_v53, %v701_v12 }
 0x119   : > { %v393_v56 = vpop.permute.xlu1 %392  ;;  %v413_v0 = vpop.permute.xlu0 %412 }
 0x11a   : > { %v395_v57 = vsel %vm394_vm6, %v391_v50, %v393_v56  ;;  %v399_v58 = vsel %vm308_vm12, %v393_v56, 0.0  ;;  %vm620_vm12 = vmpackc.low %vm641_vm1, %vm307_vm7 }
 0x11b   : > { %401 = vst.msk [vmem:[#allocation2 + $0x68] sm:$0xff] %vm394_vm6, %v399_v58 }
 0x11d   : > { %v405_v60 = vpop.permute.xlu1 %404 }
 0x11e   : > { %v407_v61 = vsel %vm406_vm8, %v403_v59, %v405_v60  ;;  %411 = vst.msk [vmem:[#allocation2 + $0x78] sm:$0xff] %vm406_vm8, %v405_v60  ;;  %v435_v62 = vld [vmem:[#allocation2 + $0x58] sm:$0xff] }
 0x11f   : > { %v447_v63 = vpack.c.bf16 %v435_v62, %v703_v13  ;;  %v621_v9 = vpack.c.bf16 %v407_v61, %v395_v57 }
 0x121   : > { %474 = vmatprep.subr.bf16.mxu0 %v447_v63  ;;  %v415_v1 = vpop.permute.xlu1 %414 }
 0x122   : > { %v417_v2 = vsel %vm416_vm10, %v413_v0, %v415_v1  ;;  %v421_v3 = vsel %vm349_vm0, %v415_v1, 0.0  ;;  %619 = vmatpush1.bf16.msk.msra.mxu0 %vm617_vm11, %v618_v4  ;;  %v437_v6 = vld [vmem:[#allocation2 + $0x68] sm:$0xff] }
 0x123   : > { %v420_v5 = vsel %vm348_vm9, %v417_v2, 0.0  ;;  %423 = vst.msk [vmem:[#allocation2 + $0x88] sm:$0xff] %vm416_vm10, %v421_v3  ;;  %vm459_vm9 = vcmask 588800  }
 0x124   : > { %v450_v10 = vpack.c.bf16 %v420_v5, %v420_v5 }
 0x125   : > { %v439_v7 = vld [vmem:[#allocation2 + $0x78] sm:$0xff] }
 0x126   : > { %v449_v8 = vpack.c.bf16 %v439_v7, %v437_v6  ;;  %v465_v13 = vsel %vm463_vm13, %v450_v10, 0 }
 0x128   : > { %476 = vmatprep.subr.bf16.mxu0 %v449_v8 }
 0x129   : > { %622 = vmatpush1.bf16.msk.msra.mxu0 %vm620_vm12, %v621_v9 }
 0x12a   : > { %v441_v11 = vld [vmem:[#allocation2 + $0x88] sm:$0xff]  ;;  %v457_v15 = vpop.permute.xlu0 %456 }
 0x12b   : > { %v451_v12 = vpack.c.bf16 %v441_v11, %v441_v11 }
 0x12d   : > { %585 = vmatprep.subr.msk.bf16.mxu0 %vm463_vm13, %v451_v12 }
 0x12e   : > { %479 = vmatpush1.bf16.msra.mxu0 %v465_v13 }
 0x131   : > { %586 = vmatmul.mubr.msk.bf16.vlgmr.msra.gmra.mrb[0].mxu0 %vm459_vm9, %v452_v14 }
 0x204   : > { %v504_v16 = vpop.f32.mrb[0].mxu0 }
 0x205   : > { %v505_v17 = vadd.f32 %v504_v16, %v457_v15  ;;  %v506_v18 = vpop.f32.mrb[1].mxu0 }
 0x206   : > { %v507_v19 = vadd.f32 %v506_v18, %v457_v15  ;;  %v508_v20 = vpop.f32.mrb[2].mxu0 }
 0x207   : > { %587 = vst [vmem:[%s548_s25 + $0x10] sm:$0xff] %v505_v17  ;;  %v509_v21 = vpop.f32.mrb[3].mxu0 }
 0x208   : > { %588 = vst [vmem:[%s548_s25 + $0x18] sm:$0xff] %v507_v19 }
 0x209 PF: > { %s16_s21 = sadd.s32 1, %s629_s21  }
 0x20a   : > { %p13_p4 = scmp.ge.s32.totalorder %s16_s21, 4  }
 0x20c   :  { %15 = sbr.rel (!%p13_p4) target bundleno = 1 (0x1), region = 74 }

// kernel: densenet_forward.7
= control target key start
LH: loop header
LB: loop body
LE: loop exit
PB: predicated region body
PF: predicated region fallthrough
CT: control target
= control target key end

     0   :  { %s836_s21 = smov 0   ;;  %s1024_s0 = inlined_call_operand.vmem [shape: f32[2,24,256], index: 0, kind: input, shape index: {}, may-alias: {0,6}]   ;;  %s1025_s1 = inlined_call_operand.vmem [shape: f32[16,1], index: 1, kind: input, shape index: {}]   ;;  %s1026_s2 = inlined_call_operand.vmem [shape: f32[16,1], index: 2, kind: input, shape index: {}]   ;;  %s1027_s3 = inlined_call_operand.vmem [shape: bf16[8,144], index: 3, kind: input, shape index: {}]   ;;  %s1028_s4 = inlined_call_operand.vmem [shape: f32[8,1], index: 4, kind: input, shape index: {}]   ;;  %s1029_s5 = inlined_call_operand.vmem [shape: s32[1,256], index: 5, kind: input, shape index: {}]   ;;  %s1030_s6 = inlined_call_operand.vmem [shape: f32[2,24,256], index: 6, kind: output, shape index: {}, may-alias: {0,6}]  }
   0x1 LB: > { %s728_s22 = sadd.s32 4294967295, %s789_s21   ;;  %p732_p0 = scmp.ge.s32.totalorder %s789_s21, 1  ;;  %s789_s21 = sphi %s836_s21, %s16_s21  }
   0x2   : > { %p212_p1 = scmp.lt.s32.totalorder %s789_s21, 3 }
   0x4   : > { %p213_p2 = pnand %p732_p0, %p212_p1 }
   0x5   : > { %v275_v0 = vld [vmem:[%s1026_s2] sm:$0xff] (!%p213_p2)  ;;  %v791_v2 = vmov (!%p213_p2), 0   ;;  %v276_v3 = vld [vmem:[%s1026_s2 + $0x8] sm:$0xff] (!%p213_p2)  ;;  %p243_p3 = scmp.lt.s32.totalorder (!%p213_p2), %s728_s22, 1  ;;  %v792_v5 = vmov (!%p213_p2), 0.0   ;;  %s793_s11 = smov (!%p213_p2), 17   ;;  %v337_v33 = vlaneseq (!%p213_p2) }
   0x6   : > { %216 = sbr.rel (%p213_p2) target bundleno = 547 (0x223), region = 44  ;;  %v259_v1 = vld [vmem:[%s1025_s1] sm:$0xff] (!%p213_p2)  ;;  %762 = vset.pattern.permute.xlu1 (!%p213_p2), %v791_v2  ;;  %761 = vset.pattern.permute.xlu0 (!%p213_p2), %v791_v2  ;;  %v260_v4 = vld [vmem:[%s1025_s1 + $0x8] sm:$0xff] (!%p213_p2)  ;;  %295 = vst [vmem:[#allocation2] sm:$0xff] (!%p213_p2), %v792_v5  ;;  %297 = vst [vmem:[#allocation2 + $0x10] sm:$0xff] (!%p213_p2), %v792_v5  ;;  %s794_s12 = smov (!%p213_p2), 16  }
   0x7   : > { %279 = vperm.xlu1 (!%p213_p2), %762, %v275_v0   ;;  %263 = vperm.xlu0 (!%p213_p2), %761, %v259_v1   ;;  %299 = vst [vmem:[#allocation2 + $0x20] sm:$0xff] (!%p213_p2), %v792_v5  ;;  %301 = vst [vmem:[#allocation2 + $0x30] sm:$0xff] (!%p213_p2), %v792_v5  ;;  %s795_s13 = smov (!%p213_p2), 15   ;;  %s796_s14 = smov (!%p213_p2), 1   ;;  %v911_v28 = vld [vmem:[%s1027_s3] sm:$0xff] (!%p213_p2)  ;;  %vm383_vm0 = vcmask (!%p213_p2), 130048  }
   0x8   : > { %303 = vst [vmem:[#allocation2 + $0x40] sm:$0xff] (!%p213_p2), %v792_v5  ;;  %305 = vst [vmem:[#allocation2 + $0x50] sm:$0xff] (!%p213_p2), %v792_v5  ;;  %s797_s15 = smov (!%p213_p2), 127   ;;  %s798_s16 = smov (!%p213_p2), 113   ;;  %v736_v29 = vcombine.high (!%p213_p2), %v911_v28, %v911_v28  ;;  %v605_v30 = vld [vmem:[%s1028_s4] sm:$0xff] (!%p213_p2)  ;;  %v338_v34 = vshrl.u32 (!%p213_p2), %v337_v33, 7 }
   0x9   : > { %307 = vst [vmem:[#allocation2 + $0x60] sm:$0xff] (!%p213_p2), %v792_v5  ;;  %309 = vst [vmem:[#allocation2 + $0x70] sm:$0xff] (!%p213_p2), %v792_v5  ;;  %s799_s17 = smov (!%p213_p2), 112   ;;  %s800_s18 = smov (!%p213_p2), 111   ;;  %v331_v31 = vld [vmem:[%s1029_s5] sm:$0x3] (!%p213_p2) }
   0xa   : > { %316 = vst [vmem:[#allocation2 + $0xa8] sm:$0xff] (!%p213_p2), %v792_v5  ;;  %318 = vst [vmem:[#allocation2 + $0xb8] sm:$0xff] (!%p213_p2), %v792_v5  ;;  %737 = vmatprep.mubr.msk.bf16.mxu0 (!%p213_p2), %vm383_vm0, %v736_v29  ;;  %v332_v32 = vadd.s32 (!%p213_p2), 4294967295, %v331_v31  ;;  %v339_v35 = vsub.s32 (!%p213_p2), 0, %v338_v34  ;;  %v343_v36 = vsub.s32 (!%p213_p2), 1, %v338_v34  ;;  %v395_v40 = vadd.s32 (!%p213_p2), 1, %v331_v31 }
   0xb   : > { %284 = vperm.xlu1 (!%p213_p2), %762, %v276_v3   ;;  %268 = vperm.xlu0 (!%p213_p2), %761, %v260_v4   ;;  %320 = vst [vmem:[#allocation2 + $0xc8] sm:$0xff] (!%p213_p2), %v792_v5  ;;  %322 = vst [vmem:[#allocation2 + $0xd8] sm:$0xff] (!%p213_p2), %v792_v5  ;;  %vm359_vm5 = vcmask (!%p213_p2), 138240   ;;  %vm370_vm7 = vcmask (!%p213_p2), 1047688   ;;  %vm390_vm11 = vcmask (!%p213_p2), 1047680   ;;  %vm418_vm14 = vcmask (!%p213_p2), 121856  }
   0xc   : > { %324 = vst [vmem:[#allocation2 + $0xe8] sm:$0xff] (!%p213_p2), %v792_v5  ;;  %326 = vst [vmem:[#allocation2 + $0xf8] sm:$0xff] (!%p213_p2), %v792_v5  ;;  %vm333_vm1 = vcmp.ge.s32.totalorder (!%p213_p2), %v332_v32, 0  ;;  %vm334_vm2 = vcmp.lt.s32.totalorder (!%p213_p2), %v332_v32, 16  ;;  %vm396_vm8 = vcmp.ge.s32.totalorder (!%p213_p2), %v395_v40, 0  ;;  %vm397_vm9 = vcmp.lt.s32.totalorder (!%p213_p2), %v395_v40, 16 }
   0xd   : > { %s1036_s22 = smov (!%p243_p3, %s728_s22), 1  ;;  %328 = vst [vmem:[#allocation2 + $0x108] sm:$0xff] %v792_v5  ;;  %330 = vst [vmem:[#allocation2 + $0x118] sm:$0xff] %v792_v5 }
   0xe   : > { %s742_s7 = smul.u32 48, %s1036_s22  ;;  %vm335_vm3 = vmand %vm333_vm1, %vm334_vm2  ;;  %vm429_vm1 = vcmask 1047672   ;;  %vm453_vm2 = vcmask 1047560  }
   0xf   : > { %v336_v37 = vsel %vm335_vm3, 1, %v791_v2  ;;  %vm398_vm10 = vmand %vm396_vm8, %vm397_vm9  ;;  %vm516_vm8 = vcmask 916480  }
  0x10   : > { %s247_s10 = scalar_lea.vmem %s1024_s0, %s742_s7  ;;  %v925_v38 = vrot.slane %v336_v37, %v339_v35  ;;  %v927_v39 = vrot.slane %v336_v37, %v343_v36  ;;  %v399_v49 = vsel %vm398_vm10, 1, %v791_v2  ;;  %s698_s29 = scalar_lea.vmem %s1030_s6, %s742_s7 }
  0x11   : > { %v255_v6 = vld [vmem:[%s247_s10] sm:$0xff]  ;;  %v256_v7 = vld [vmem:[%s247_s10 + $0x8] sm:$0xff]  ;;  %v257_v12 = vld [vmem:[%s247_s10 + $0x10] sm:$0xff]  ;;  %v946_v55 = vrot.slane %v399_v49, %v339_v35  ;;  %v948_v56 = vrot.slane %v399_v49, %v343_v36 }
  0x12   : > { %v258_v13 = vld [vmem:[%s247_s10 + $0x18] sm:$0xff]  ;;  %vm345_vm4 = vcmp.eq.s32.totalorder %v925_v38, 1  ;;  %vm346_vm6 = vcmp.eq.s32.totalorder %v927_v39, 1 }
  0x13   : > { %vm940_vm12 = vmpackc.low %vm346_vm6, %vm346_vm6  ;;  %vm408_vm13 = vcmp.eq.s32.totalorder %v946_v55, 1  ;;  %vm409_vm15 = vcmp.eq.s32.totalorder %v948_v56, 1 }
  0x14   : > { %vm768_vm3 = vmpackc.low %vm409_vm15, %vm409_vm15 }
  0x15   : > { %vm995_vm9 = vmpackc.low %vm408_vm13, %vm408_vm13 }
  0x16   : > { %vm777_vm10 = vmpackc.low %vm345_vm4, %vm345_vm4 }
  0x86   : > { %v280_v8 = vpop.permute.xlu1 %279  ;;  %v264_v9 = vpop.permute.xlu0 %263 }
  0x87   : > { %v271_v10 = vmul.f32 %v264_v9, %v255_v6  ;;  %v272_v11 = vmul.f32 %v264_v9, %v256_v7 }
  0x89   : > { %v287_v14 = vadd.f32 %v280_v8, %v271_v10  ;;  %v288_v15 = vadd.f32 %v280_v8, %v272_v11 }
  0x8a   : > { %v269_v16 = vpop.permute.xlu0 %268  ;;  %v285_v21 = vpop.permute.xlu1 %284 }
  0x8b   : > { %v866_v17 = vmax.f32 %v287_v14, 0.0  ;;  %v868_v18 = vmax.f32 %v288_v15, 0.0  ;;  %v273_v19 = vmul.f32 %v269_v16, %v257_v12  ;;  %v274_v20 = vmul.f32 %v269_v16, %v258_v13 }
  0x8d   : > { %v289_v22 = vadd.f32 %v285_v21, %v273_v19  ;;  %v290_v23 = vadd.f32 %v285_v21, %v274_v20  ;;  %353 = vrot.lane.b32.xlu1 %v868_v18, %s793_s11  ;;  %351 = vrot.lane.b32.xlu0 %v866_v17, %s793_s11 }
  0x8f   : > { %v872_v24 = vmax.f32 %v289_v22, 0.0  ;;  %v874_v25 = vmax.f32 %v290_v23, 0.0 }
  0x91   : > { %357 = vrot.lane.b32.xlu1 %v874_v25, %s793_s11  ;;  %355 = vrot.lane.b32.xlu0 %v872_v24, %s793_s11  ;;  %v595_v26 = vpack.c.bf16 %v874_v25, %v868_v18  ;;  %v594_v27 = vpack.c.bf16 %v872_v24, %v866_v17 }
  0x95   : > { %377 = vrot.lane.b32.xlu1 %v868_v18, %s794_s12  ;;  %375 = vrot.lane.b32.xlu0 %v866_v17, %s794_s12 }
  0x99   : > { %381 = vrot.lane.b32.xlu1 %v874_v25, %s794_s12  ;;  %379 = vrot.lane.b32.xlu0 %v872_v24, %s794_s12 }
  0x9d   : > { %412 = vrot.lane.b32.xlu1 %v868_v18, %s795_s13  ;;  %410 = vrot.lane.b32.xlu0 %v866_v17, %s795_s13 }
  0xa1   : > { %416 = vrot.lane.b32.xlu1 %v874_v25, %s795_s13  ;;  %414 = vrot.lane.b32.xlu0 %v872_v24, %s795_s13 }
  0xa5   : > { %436 = vrot.lane.b32.xlu1 %v868_v18, %s796_s14  ;;  %434 = vrot.lane.b32.xlu0 %v866_v17, %s796_s14 }
  0xa9   : > { %440 = vrot.lane.b32.xlu1 %v874_v25, %s796_s14  ;;  %438 = vrot.lane.b32.xlu0 %v872_v24, %s796_s14 }
  0xad   : > { %464 = vrot.lane.b32.xlu1 %v868_v18, %s797_s15  ;;  %462 = vrot.lane.b32.xlu0 %v866_v17, %s797_s15 }
  0xb1   : > { %468 = vrot.lane.b32.xlu1 %v874_v25, %s797_s15  ;;  %466 = vrot.lane.b32.xlu0 %v872_v24, %s797_s15 }
  0xb5   : > { %487 = vrot.lane.b32.xlu1 %v868_v18, %s798_s16  ;;  %485 = vrot.lane.b32.xlu0 %v866_v17, %s798_s16 }
  0xb9   : > { %491 = vrot.lane.b32.xlu1 %v874_v25, %s798_s16  ;;  %489 = vrot.lane.b32.xlu0 %v872_v24, %s798_s16 }
  0xbd   : > { %510 = vrot.lane.b32.xlu1 %v868_v18, %s799_s17  ;;  %508 = vrot.lane.b32.xlu0 %v866_v17, %s799_s17 }
  0xc1   : > { %514 = vrot.lane.b32.xlu1 %v874_v25, %s799_s17  ;;  %512 = vrot.lane.b32.xlu0 %v872_v24, %s799_s17 }
  0xc5   : > { %529 = vrot.lane.b32.xlu1 %v868_v18, %s800_s18  ;;  %527 = vrot.lane.b32.xlu0 %v866_v17, %s800_s18 }
  0xc9   : > { %533 = vrot.lane.b32.xlu1 %v874_v25, %s800_s18  ;;  %531 = vrot.lane.b32.xlu0 %v872_v24, %s800_s18 }
  0xcd   : > { %608 = vperm.xlu0 %761, %v605_v30  }
  0xff   : > { %v354_v41 = vpop.permute.xlu1 %353  ;;  %v352_v42 = vpop.permute.xlu0 %351 }
 0x100   : > { %v360_v43 = vsel %vm359_vm5, %v352_v42, %v354_v41  ;;  %v366_v44 = vsel %vm345_vm4, %v352_v42, 0.0 }
 0x101   : > { %371 = vst.msk [vmem:[#allocation2] sm:$0xff] %vm370_vm7, %v366_v44 }
 0x103   : > { %v358_v45 = vpop.permute.xlu1 %357  ;;  %v356_v46 = vpop.permute.xlu0 %355 }
 0x104   : > { %v361_v47 = vsel %vm359_vm5, %v356_v46, %v358_v45  ;;  %v368_v48 = vsel %vm345_vm4, %v356_v46, 0.0  ;;  %vm470_vm5 = vcmask 1039360  }
 0x105   : > { %373 = vst.msk [vmem:[#allocation2 + $0x10] sm:$0xff] %vm370_vm7, %v368_v48  ;;  %v766_v54 = vpack.c.bf16 %v361_v47, %v360_v43  ;;  %vm493_vm7 = vcmask 924672  }
 0x107   : > { %v378_v50 = vpop.permute.xlu1 %377  ;;  %v376_v51 = vpop.permute.xlu0 %375  ;;  %767 = vmatprep.subr.msk.bf16.mxu0 %vm940_vm12, %v766_v54 }
 0x108   : > { %v384_v52 = vsel %vm383_vm0, %v376_v51, %v378_v50  ;;  %391 = vst.msk [vmem:[#allocation2 + $0x20] sm:$0xff] %vm390_vm11, %v376_v51  ;;  %v550_v60 = vld [vmem:[#allocation2] sm:$0xff] }
 0x10b   : > { %v382_v57 = vpop.permute.xlu1 %381  ;;  %v380_v58 = vpop.permute.xlu0 %379 }
 0x10c   : > { %v385_v59 = vsel %vm383_vm0, %v380_v58, %v382_v57  ;;  %393 = vst.msk [vmem:[#allocation2 + $0x30] sm:$0xff] %vm390_vm11, %v380_v58  ;;  %v552_v61 = vld [vmem:[#allocation2 + $0x10] sm:$0xff]  ;;  %vm442_vm0 = vcmask 7168  }
 0x10d   : > { %v586_v62 = vpack.c.bf16 %v552_v61, %v550_v60  ;;  %v589_v63 = vpack.c.bf16 %v385_v59, %v384_v52 }
 0x10f   : > { %v413_v0 = vpop.permute.xlu1 %412  ;;  %v411_v1 = vpop.permute.xlu0 %410  ;;  %621 = vmatpush1.bf16.msra.mxu0 %v586_v62  ;;  %v554_v6 = vld [vmem:[#allocation2 + $0x20] sm:$0xff] }
 0x110   : > { %v419_v2 = vsel %vm418_vm14, %v411_v1, %v413_v0  ;;  %v425_v3 = vsel %vm408_vm13, %v411_v1, 0.0  ;;  %622 = vmatprep.subr.bf16.mxu0 %v589_v63 }
 0x111   : > { %430 = vst.msk [vmem:[#allocation2 + $0x40] sm:$0xff] %vm429_vm1, %v425_v3 }
 0x113   : > { %v417_v4 = vpop.permute.xlu1 %416  ;;  %v415_v5 = vpop.permute.xlu0 %414  ;;  %v556_v7 = vld [vmem:[#allocation2 + $0x30] sm:$0xff] }
 0x114   : > { %v420_v8 = vsel %vm418_vm14, %v415_v5, %v417_v4  ;;  %v427_v9 = vsel %vm408_vm13, %v415_v5, 0.0  ;;  %v588_v10 = vpack.c.bf16 %v556_v7, %v554_v6 }
 0x115   : > { %432 = vst.msk [vmem:[#allocation2 + $0x50] sm:$0xff] %vm429_vm1, %v427_v9  ;;  %v769_v15 = vpack.c.bf16 %v420_v8, %v419_v2 }
 0x116   : > { %623 = vmatpush1.bf16.msra.mxu0 %v588_v10 }
 0x117   : > { %v437_v11 = vpop.permute.xlu1 %436  ;;  %v435_v12 = vpop.permute.xlu0 %434  ;;  %770 = vmatprep.subr.msk.bf16.mxu0 %vm768_vm3, %v769_v15 }
 0x118   : > { %v443_v13 = vsel %vm442_vm0, %v435_v12, %v437_v11  ;;  %v449_v14 = vsel %vm345_vm4, %v435_v12, 0.0  ;;  %v558_v22 = vld [vmem:[#allocation2 + $0x40] sm:$0xff]  ;;  %v735_v11 = vcombine.low %v911_v28, %v911_v28 }
 0x119   : > { %454 = vst.msk [vmem:[#allocation2 + $0x60] sm:$0xff] %vm453_vm2, %v449_v14 }
 0x11b   : > { %v441_v16 = vpop.permute.xlu1 %440  ;;  %v439_v19 = vpop.permute.xlu0 %438 }
 0x11c   : > { %v444_v20 = vsel %vm442_vm0, %v439_v19, %v441_v16  ;;  %v451_v21 = vsel %vm345_vm4, %v439_v19, 0.0  ;;  %v560_v23 = vld [vmem:[#allocation2 + $0x50] sm:$0xff] }
 0x11d   : > { %456 = vst.msk [vmem:[#allocation2 + $0x70] sm:$0xff] %vm453_vm2, %v451_v21  ;;  %v590_v29 = vpack.c.bf16 %v560_v23, %v558_v22  ;;  %v772_v34 = vpack.c.bf16 %v444_v20, %v443_v13 }
 0x11f   : > { %v465_v30 = vpop.permute.xlu1 %464  ;;  %v463_v31 = vpop.permute.xlu0 %462  ;;  %625 = vmatpush1.bf16.msra.mxu0 %v590_v29 }
 0x120   : > { %v478_v32 = vsel %vm409_vm15, %v465_v30, 0.0  ;;  %v471_v33 = vsel %vm470_vm5, %v463_v31, %v465_v30  ;;  %773 = vmatprep.subr.msk.bf16.mxu0 %vm940_vm12, %v772_v34  ;;  %v562_v41 = vld [vmem:[#allocation2 + $0x60] sm:$0xff] }
 0x121   : > { %482 = vst.msk [vmem:[#allocation2 + $0xa8] sm:$0xff] %vm470_vm5, %v478_v32 }
 0x123   : > { %v469_v35 = vpop.permute.xlu1 %468  ;;  %v467_v36 = vpop.permute.xlu0 %466 }
 0x124   : > { %v480_v37 = vsel %vm409_vm15, %v469_v35, 0.0  ;;  %v472_v40 = vsel %vm470_vm5, %v467_v36, %v469_v35  ;;  %v564_v42 = vld [vmem:[#allocation2 + $0x70] sm:$0xff] }
 0x125   : > { %484 = vst.msk [vmem:[#allocation2 + $0xb8] sm:$0xff] %vm470_vm5, %v480_v37  ;;  %v592_v43 = vpack.c.bf16 %v564_v42, %v562_v41  ;;  %v775_v24 = vpack.c.bf16 %v472_v40, %v471_v33 }
 0x127   : > { %v488_v44 = vpop.permute.xlu1 %487  ;;  %v486_v45 = vpop.permute.xlu0 %485  ;;  %627 = vmatpush1.bf16.msra.mxu0 %v592_v43 }
 0x128   : > { %v501_v46 = vsel %vm346_vm6, %v488_v44, 0.0  ;;  %v494_v47 = vsel %vm493_vm7, %v486_v45, %v488_v44  ;;  %628 = vmatprep.subr.bf16.mxu0 %v595_v26  ;;  %v571_v52 = vld [vmem:[#allocation2 + $0xa8] sm:$0xff] }
 0x129   : > { %505 = vst.msk [vmem:[#allocation2 + $0xc8] sm:$0xff] %vm493_vm7, %v501_v46 }
 0x12b   : > { %v492_v48 = vpop.permute.xlu1 %491  ;;  %v490_v49 = vpop.permute.xlu0 %489  ;;  %629 = vmatpush1.bf16.msra.mxu0 %v594_v27 }
 0x12c   : > { %v503_v50 = vsel %vm346_vm6, %v492_v48, 0.0  ;;  %v495_v51 = vsel %vm493_vm7, %v490_v49, %v492_v48  ;;  %v573_v53 = vld [vmem:[#allocation2 + $0xb8] sm:$0xff]  ;;  %vm535_vm6 = vcmask 908288  }
 0x12d   : > { %507 = vst.msk [vmem:[#allocation2 + $0xd8] sm:$0xff] %vm493_vm7, %v503_v50  ;;  %v597_v18 = vpack.c.bf16 %v573_v53, %v571_v52  ;;  %v778_v0 = vpack.c.bf16 %v495_v51, %v494_v47 }
 0x12f   : > { %v511_v25 = vpop.permute.xlu1 %510  ;;  %v509_v26 = vpop.permute.xlu0 %508  ;;  %630 = vmatprep.subr.bf16.mxu0 %v597_v18 }
 0x130   : > { %524 = vst.msk [vmem:[#allocation2 + $0xe8] sm:$0xff] %vm516_vm8, %v511_v25  ;;  %v517_v54 = vsel %vm516_vm8, %v509_v26, %v511_v25  ;;  %776 = vmatpush1.bf16.msk.msra.mxu0 %vm995_vm9, %v775_v24  ;;  %v575_v58 = vld [vmem:[#allocation2 + $0xc8] sm:$0xff] }
 0x133   : > { %v515_v27 = vpop.permute.xlu1 %514  ;;  %v513_v39 = vpop.permute.xlu0 %512 }
 0x134   : > { %526 = vst.msk [vmem:[#allocation2 + $0xf8] sm:$0xff] %vm516_vm8, %v515_v27  ;;  %v518_v57 = vsel %vm516_vm8, %v513_v39, %v515_v27  ;;  %v577_v59 = vld [vmem:[#allocation2 + $0xd8] sm:$0xff] }
 0x135   : > { %v599_v60 = vpack.c.bf16 %v577_v59, %v575_v58  ;;  %v600_v38 = vpack.c.bf16 %v518_v57, %v517_v54 }
 0x137   : > { %v530_v61 = vpop.permute.xlu1 %529  ;;  %v528_v62 = vpop.permute.xlu0 %527  ;;  %632 = vmatprep.subr.bf16.mxu0 %v599_v60  ;;  %v579_v3 = vld [vmem:[#allocation2 + $0xe8] sm:$0xff] }
 0x138   : > { %v543_v55 = vsel %vm409_vm15, %v530_v61, 0.0  ;;  %v536_v63 = vsel %vm535_vm6, %v528_v62, %v530_v61  ;;  %779 = vmatpush1.bf16.msk.msra.mxu0 %vm777_vm10, %v778_v0 }
 0x139   : > { %547 = vst.msk [vmem:[#allocation2 + $0x108] sm:$0xff] %vm535_vm6, %v543_v55 }
 0x13b   : > { %v534_v1 = vpop.permute.xlu1 %533  ;;  %v532_v2 = vpop.permute.xlu0 %531  ;;  %v581_v4 = vld [vmem:[#allocation2 + $0xf8] sm:$0xff] }
 0x13c   : > { %v545_v5 = vsel %vm409_vm15, %v534_v1, 0.0  ;;  %v537_v6 = vsel %vm535_vm6, %v532_v2, %v534_v1  ;;  %v601_v7 = vpack.c.bf16 %v581_v4, %v579_v3 }
 0x13d   : > { %549 = vst.msk [vmem:[#allocation2 + $0x118] sm:$0xff] %vm535_vm6, %v545_v5  ;;  %v781_v12 = vpack.c.bf16 %v537_v6, %v536_v63 }
 0x13e   : > { %634 = vmatprep.subr.bf16.mxu0 %v601_v7 }
 0x13f   : > { %635 = vmatpush1.bf16.msra.mxu0 %v600_v38 }
 0x140   : > { %v583_v8 = vld [vmem:[#allocation2 + $0x108] sm:$0xff] }
 0x144   : > { %v585_v9 = vld [vmem:[#allocation2 + $0x118] sm:$0xff] }
 0x145   : > { %v603_v10 = vpack.c.bf16 %v585_v9, %v583_v8 }
 0x147   : > { %636 = vmatprep.subr.bf16.mxu0 %v603_v10 }
 0x148   : > { %782 = vmatpush1.bf16.msk.msra.mxu0 %vm995_vm9, %v781_v12 }
 0x14b   : > { %653 = vmatmul.mubr.bf16.vlgmr.msra.gmra.mrb[0].mxu0 %v735_v11 }
 0x14c   : > { %v609_v56 = vpop.permute.xlu0 %608 }
 0x21e   : > { %v654_v13 = vpop.f32.mrb[0].mxu0 }
 0x21f   : > { %v655_v14 = vadd.f32 %v654_v13, %v609_v56  ;;  %v656_v15 = vpop.f32.mrb[1].mxu0 }
 0x220   : > { %v657_v16 = vadd.f32 %v656_v15, %v609_v56  ;;  %v658_v19 = vpop.f32.mrb[2].mxu0 }
 0x221   : > { %738 = vst [vmem:[%s698_s29 + $0x20] sm:$0xff] %v655_v14  ;;  %v659_v20 = vpop.f32.mrb[3].mxu0 }
 0x222   : > { %739 = vst [vmem:[%s698_s29 + $0x28] sm:$0xff] %v657_v16 }
 0x223 PF: > { %s16_s21 = sadd.s32 1, %s789_s21  }
 0x224   : > { %p13_p4 = scmp.ge.s32.totalorder %s16_s21, 4  }
 0x226   :  { %15 = sbr.rel (!%p13_p4) target bundleno = 1 (0x1), region = 74 }

</bundles_post_ra>
